<compile_context>
chip_gen: v7x
topology: tpu7x:2x2x1
jax: 0.10.0
libtpu: 0.0.40
codegen_flags: <defaults>
</compile_context>

<pallas_src>
import functools

import jax
import jax.numpy as jnp
from jax.experimental import pallas as pl
from jax.experimental.pallas import tpu as pltpu

EPS = 1e-5
LANE = 128


def _round_up(x, m):
    return (x + m - 1) // m * m


def _vmem_limit_bytes():
    # ~3/4 of physical VMEM: 48 MiB on v7x (64 MiB), 96 MiB on v5e/v6e (128 MiB).
    cap = 64 * 1024 * 1024
    try:
        info = pltpu.get_tpu_info()
        cap = int(getattr(info, "vmem_capacity_bytes", cap))
    except Exception:
        pass
    return int(min(cap * 3 // 4, 96 * 1024 * 1024))


VMEM_LIMIT = _vmem_limit_bytes()


def _row_tile(m, cap=1024):
    """Largest multiple-of-8 divisor of m that is <= cap (m must be 8-aligned)."""
    assert m % 8 == 0, m
    t = min(m, cap)
    t -= t % 8
    while t >= 8:
        if m % t == 0:
            return t
        t -= 8
    return 8


# ---------------------------------------------------------------------------
# Pass 1: tap-packed, relayout-free 3-D conv.  Grid = (batch entry,) parallel.
# ---------------------------------------------------------------------------
def _conv_taps_kernel(x_ref, w_ref, y_ref, s_ref, *, ksize, stride, Do):
    """One batch entry: the conv is `ksize` fat MXU matmuls (one per depth tap).

    x_ref: [1, stride, Dq, R, Kp] bf16  in-plane taps packed into Kp lanes,
                                        depth split into `stride` phases so
                                        every tap is a *static* leading slice.
    w_ref: [ksize, Kp, Cout_p]    bf16  (constant index_map -> resident).
    y_ref: [Do*R, Cout_p]         bf16  raw conv output (f32 acc stays here).
    s_ref: [1, 2, Cout_p]         f32   per-entry partial sum / sum-of-squares.
    """
    R = x_ref.shape[3]
    Kp = x_ref.shape[4]
    cout_p = w_ref.shape[2]
    rows = Do * R

    acc = jnp.zeros((rows, cout_p), jnp.float32)
    for kd in range(ksize):
        phase, off = kd % stride, kd // stride
        blk = x_ref[0, phase, off:off + Do, :, :]            # [Do, R, Kp]
        acc += jnp.dot(blk.reshape(rows, Kp), w_ref[kd],     # bf16 x bf16
                       preferred_element_type=jnp.float32)   # f32 accumulate
    y_ref[...] = acc.astype(y_ref.dtype)                     # bf16 store only
    s0 = jnp.sum(acc, axis=0, keepdims=True)
    s1 = jnp.sum(acc * acc, axis=0, keepdims=True)
    s_ref[...] = jnp.concatenate([s0, s1], axis=0)[None]


def _conv3d_pass1(packed, w_taps, *, Do, stride):
    """packed: [N, stride, Dq, R, Kp] bf16;  w_taps: [k, Kp, Cout_p] bf16.

    Returns (y [N*Do*R, Cout_p] bf16, global stats [2, Cout_p] f32).
    """
    N, S, Dq, R, Kp = packed.shape
    k, Kp_w, Cout_p = w_taps.shape
    assert S == stride and Kp_w == Kp
    rows = Do * R
    M = N * rows

    kernel = functools.partial(_conv_taps_kernel, ksize=k, stride=stride, Do=Do)
    flops = 2 * M * k * Kp * Cout_p
    bytes_accessed = (packed.size * packed.dtype.itemsize
                      + w_taps.size * w_taps.dtype.itemsize
                      + M * Cout_p * 2 + N * 2 * Cout_p * 4)

    y, stats = pl.pallas_call(
        kernel,
        grid=(N,),
        in_specs=[
            pl.BlockSpec((1, S, Dq, R, Kp), lambda n: (n, 0, 0, 0, 0)),
            # TODO(synk): tile the weight over Cout / kd once k*Kp*Cout_p*2B
            # stops being small (deep backbone layers on v7x's 64 MiB VMEM).
            pl.BlockSpec((k, Kp, Cout_p), lambda n: (0, 0, 0)),
        ],
        out_specs=(
            pl.BlockSpec((rows, Cout_p), lambda n: (n, 0)),
            pl.BlockSpec((1, 2, Cout_p), lambda n: (n, 0, 0)),
        ),
        out_shape=(
            jax.ShapeDtypeStruct((M, Cout_p), jnp.bfloat16),
            jax.ShapeDtypeStruct((N, 2, Cout_p), jnp.float32),
        ),
        compiler_params=pltpu.CompilerParams(
            # Per-entry partial stats -> no cross-step accumulation -> safe to
            # shard the grid across TensorCores (v7x megacore).
            dimension_semantics=("parallel",),
            vmem_limit_bytes=VMEM_LIMIT,
        ),
        cost_estimate=pl.CostEstimate(flops=flops, transcendentals=0,
                                      bytes_accessed=bytes_accessed),
    )(packed, w_taps)
    return y, jnp.sum(stats, axis=0)   # tiny reduction outside the kernel


# ---------------------------------------------------------------------------
# Pass 2: BN(y2) + residual (with its own fused BN) + ReLU + pooling partials
# ---------------------------------------------------------------------------
def _bn_math(y, stats, g, b, inv_m, eps):
    mean = stats[0:1, :] * inv_m
    var = jnp.maximum(stats[1:2, :] * inv_m - mean * mean, 0.0)
    inv_std = jax.lax.rsqrt(var + eps)
    return (y - mean) * (inv_std * g) + b


def _bn2_dsbn_relu_kernel(y_ref, s_ref, g_ref, b_ref, yd_ref, sd_ref, gd_ref,
                          bd_ref, o_ref, p_ref, *, inv_m, eps):
    out = _bn_math(y_ref[...].astype(jnp.float32), s_ref[...], g_ref[...],
                   b_ref[...], inv_m, eps)
    res = _bn_math(yd_ref[...].astype(jnp.float32), sd_ref[...], gd_ref[...],
                   bd_ref[...], inv_m, eps)
    out = jnp.maximum(out + res, 0.0)
    o_ref[...] = out.astype(o_ref.dtype)
    p_ref[...] = jnp.sum(out, axis=0, keepdims=True)[None]   # pooling partial


def _bn2_addres_relu_kernel(y_ref, s_ref, g_ref, b_ref, r_ref, o_ref, p_ref, *,
                            inv_m, eps):
    out = _bn_math(y_ref[...].astype(jnp.float32), s_ref[...], g_ref[...],
                   b_ref[...], inv_m, eps)
    out = jnp.maximum(out + r_ref[...].astype(jnp.float32), 0.0)
    o_ref[...] = out.astype(o_ref.dtype)
    p_ref[...] = jnp.sum(out, axis=0, keepdims=True)[None]


def _bn_residual_relu_pool(y, stats, gamma, beta, *, rows_per_entry, ds=None,
                           identity_res=None):
    """relu(BN(y) + residual) with per-tile global-average-pool partial sums."""
    M, Cp = y.shape
    assert M % rows_per_entry == 0
    n = M // rows_per_entry
    tm = _row_tile(rows_per_entry)         # tiles never straddle a batch entry
    tiles = M // tm
    inv_m = 1.0 / M

    row_spec = pl.BlockSpec((tm, Cp), lambda i: (i, 0))
    stat_spec = pl.BlockSpec((2, Cp), lambda i: (0, 0))
    vec_spec = pl.BlockSpec((1, Cp), lambda i: (0, 0))
    pool_spec = pl.BlockSpec((1, 1, Cp), lambda i: (i, 0, 0))

    if ds is not None:
        yd, sd, gd, bd = ds
        kernel = functools.partial(_bn2_dsbn_relu_kernel, inv_m=inv_m, eps=EPS)
        in_specs = [row_spec, stat_spec, vec_spec, vec_spec,
                    row_spec, stat_spec, vec_spec, vec_spec]
        args = [y, stats, gamma, beta, yd, sd, gd, bd]
    else:
        kernel = functools.partial(_bn2_addres_relu_kernel, inv_m=inv_m, eps=EPS)
        in_specs = [row_spec, stat_spec, vec_spec, vec_spec, row_spec]
        args = [y, stats, gamma, beta, identity_res]

    bytes_accessed = (sum(int(a.size) * a.dtype.itemsize for a in args)
                      + M * Cp * 4 + tiles * Cp * 4)
    feats, pools = pl.pallas_call(
        kernel,
        grid=(tiles,),
        in_specs=in_specs,
        out_specs=(row_spec, pool_spec),
        out_shape=(jax.ShapeDtypeStruct((M, Cp), jnp.float32),
                   jax.ShapeDtypeStruct((tiles, 1, Cp), jnp.float32)),
        compiler_params=pltpu.CompilerParams(
            dimension_semantics=("parallel",),   # independent tiles
            vmem_limit_bytes=VMEM_LIMIT,
        ),
        cost_estimate=pl.CostEstimate(flops=16 * M * Cp, transcendentals=0,
                                      bytes_accessed=bytes_accessed),
    )(*args)
    pooled = pools.reshape(n, rows_per_entry // tm, Cp).sum(axis=1) / rows_per_entry
    return feats, pooled


# ---------------------------------------------------------------------------
# Head: Linear(features, 1) + Sigmoid (tiny, whole-problem-in-VMEM)
# ---------------------------------------------------------------------------
def _head_kernel(f_ref, w_ref, b_ref, o_ref):
    logits = jnp.dot(f_ref[...], w_ref[...],
                     preferred_element_type=jnp.float32) + b_ref[...]
    o_ref[...] = jax.nn.sigmoid(logits)


def _fc_sigmoid(feats, w, b):
    vmem = pl.BlockSpec(memory_space=pltpu.MemorySpace.VMEM)
    return pl.pallas_call(
        _head_kernel,
        in_specs=[vmem, vmem, vmem],
        out_specs=vmem,
        out_shape=jax.ShapeDtypeStruct((feats.shape[0], w.shape[1]), jnp.float32),
    )(feats, w, b)


# ---------------------------------------------------------------------------
# Data-prep glue (pure layout work; stays lane-dense, no in-kernel relayouts)
# ---------------------------------------------------------------------------
def _pack_taps(x, ksize, stride, pad_spatial, pad_depth):
    """NDHWC -> [N, stride, Dq, Ho*Wo, Kp] bf16.

    The k*k in-plane taps are packed into the lane/contraction dim (Kp) and
    depth is split into `stride` phases so the conv kernel only ever takes
    static leading-dim slices.  For these channel counts the packed tensor is
    no larger than a 128-lane zero-padded plane would be.

    TODO(synk): for large Cin (k*k*Cin >> 128) split the in-plane taps into
    128-lane groups instead of one wide contraction to bound HBM expansion.
    """
    N, D, H, W, C = x.shape
    Do = (D + 2 * pad_depth - ksize) // stride + 1
    Ho = (H + 2 * pad_spatial - ksize) // stride + 1
    Wo = (W + 2 * pad_spatial - ksize) // stride + 1
    R = Ho * Wo
    assert R % 8 == 0, "per-plane rows must be sublane aligned"
    Dp = D + 2 * pad_depth
    xp = jnp.pad(x, ((0, 0), (pad_depth, pad_depth),
                     (pad_spatial, pad_spatial), (pad_spatial, pad_spatial),
                     (0, 0)))
    taps = []
    for kh in range(ksize):
        for kw in range(ksize):
            taps.append(xp[:, :, kh:kh + (Ho - 1) * stride + 1:stride,
                              kw:kw + (Wo - 1) * stride + 1:stride, :])
    packed = taps[0] if len(taps) == 1 else jnp.concatenate(taps, axis=-1)
    Kp = _round_up(ksize * ksize * C, LANE)
    packed = jnp.pad(packed, ((0, 0), (0, 0), (0, 0), (0, 0),
                              (0, Kp - ksize * ksize * C)))
    packed = packed.reshape(N, Dp, R, Kp)
    Dq = -(-Dp // stride)
    if Dq * stride != Dp:
        packed = jnp.pad(packed, ((0, 0), (0, Dq * stride - Dp), (0, 0), (0, 0)))
    packed = jnp.transpose(packed.reshape(N, Dq, stride, R, Kp), (0, 2, 1, 3, 4))
    return packed.astype(jnp.bfloat16), (Do, Ho, Wo)


def _prep_conv_weight(w, kp, cout_p):
    """PyTorch Conv3d weight [Co, Ci, kd, kh, kw] -> bf16 [kd, Kp, Co_p] with
    the (kh, kw, ci) taps packed along the contraction dim (matches _pack_taps)."""
    co, ci, kd, kh, kw = w.shape
    wt = jnp.transpose(w, (2, 3, 4, 1, 0)).reshape(kd, kh * kw * ci, co)
    wt = jnp.pad(wt, ((0, 0), (0, kp - kh * kw * ci), (0, cout_p - co)))
    return wt.astype(jnp.bfloat16)


def _pad_cols(v, cp):
    v = v.astype(jnp.float32)
    return jnp.pad(v, ((0, 0), (0, cp - v.shape[-1])))


# ---------------------------------------------------------------------------
# Conv backbone stand-in: Conv3d+BN+ReLU residual block (train-mode BN)
# ---------------------------------------------------------------------------
def _block_forward(x_ncdhw, params, stride):
    """Returns (feats NDHWC [N, Do, Ho, Wo, Cout], pooled [N, Cout])."""
    x = jnp.transpose(x_ncdhw, (0, 2, 3, 4, 1)).astype(jnp.float32)  # NDHWC
    N, D, H, W, Cin = x.shape
    Cout = params["conv1_w"].shape[0]
    Cout_p = _round_up(Cout, LANE)

    # ---- conv1 (3x3x3, stride, pad 1): raw conv + global BN sums ------------
    packed1, (Do, Ho, Wo) = _pack_taps(x, 3, stride, pad_spatial=1, pad_depth=1)
    w1 = _prep_conv_weight(params["conv1_w"], packed1.shape[-1], Cout_p)
    y1, s1 = _conv3d_pass1(packed1, w1, Do=Do, stride=stride)
    m = N * Do * Ho * Wo
    inv_m = 1.0 / m

    # ---- conv1 -> conv2 fusion: bn1 + relu are folded into the conv2 input
    # packing (XLA fuses the elementwise with the pad/window gather), so the
    # bn1 activation never makes a separate HBM round trip. -------------------
    mean1 = s1[0, :Cout] * inv_m
    var1 = jnp.maximum(s1[1, :Cout] * inv_m - mean1 * mean1, 0.0)
    sc1 = params["bn1_g"].reshape(-1) * jax.lax.rsqrt(var1 + EPS)
    sh1 = params["bn1_b"].reshape(-1) - mean1 * sc1
    out1 = y1.reshape(N, Do, Ho, Wo, Cout_p)[..., :Cout].astype(jnp.float32)
    out1 = jnp.maximum(out1 * sc1 + sh1, 0.0)

    # ---- conv2 (3x3x3, stride 1, pad 1) --------------------------------------
    packed2, dims2 = _pack_taps(out1, 3, 1, pad_spatial=1, pad_depth=1)
    assert dims2 == (Do, Ho, Wo)
    w2 = _prep_conv_weight(params["conv2_w"], packed2.shape[-1], Cout_p)
    y2, s2 = _conv3d_pass1(packed2, w2, Do=Do, stride=1)

    # ---- residual branch ------------------------------------------------------
    ds = None
    identity_res = None
    if params.get("ds_w") is not None:
        # 1x1x1 stride-s conv == stride-slice then 1x1x1 stride-1 conv.
        xs = x[:, ::stride, ::stride, ::stride, :]
        packedd, dimsd = _pack_taps(xs, 1, 1, pad_spatial=0, pad_depth=0)
        assert dimsd == (Do, Ho, Wo)
        wd = _prep_conv_weight(params["ds_w"], packedd.shape[-1], Cout_p)
        yd, sd = _conv3d_pass1(packedd, wd, Do=Do, stride=1)
        ds = (yd, sd, _pad_cols(params["ds_bn_g"], Cout_p),
              _pad_cols(params["ds_bn_b"], Cout_p))
    else:
        # identity residual (stride==1, Cin==Cout): rows already in conv order
        identity_res = jnp.pad(
            x, ((0, 0), (0, 0), (0, 0), (0, 0), (0, Cout_p - Cin))
        ).reshape(m, Cout_p).astype(jnp.bfloat16)

    # ---- bn2 (+ fused downsample BN | + identity) + relu + fused pooling -----
    feats, pooled = _bn_residual_relu_pool(
        y2, s2, _pad_cols(params["bn2_g"], Cout_p),
        _pad_cols(params["bn2_b"], Cout_p),
        rows_per_entry=Do * Ho * Wo, ds=ds, identity_res=identity_res)

    feats = feats.reshape(N, Do, Ho, Wo, Cout_p)[..., :Cout]
    return feats, pooled[:, :Cout]


def res_block_forward(x_ncdhw, params, stride):
    feats, _ = _block_forward(x_ncdhw, params, stride)
    return jnp.transpose(feats, (0, 4, 1, 2, 3))          # NCDHW


def discriminator_forward(x_ncdhw, params, stride):
    """backbone features -> global average pool -> Linear(., 1) -> Sigmoid."""
    _, pooled = _block_forward(x_ncdhw, params, stride)   # [N, Cout]
    n, cout = pooled.shape
    cp = _round_up(cout, LANE)
    pooled_p = jnp.pad(pooled, ((0, 0), (0, cp - cout)))
    fc_w_p = jnp.pad(params["fc_w"].astype(jnp.float32),
                     ((0, cp - cout), (0, LANE - 1)))
    fc_b_p = jnp.pad(params["fc_b"].reshape(1, 1).astype(jnp.float32),
                     ((0, 0), (0, LANE - 1)))
    probs = _fc_sigmoid(pooled_p, fc_w_p, fc_b_p)
    return probs[:, :1]


# ---------------------------------------------------------------------------
# Pure-JAX reference (mirrors the kernel's bf16 operand + storage precision)
# ---------------------------------------------------------------------------
def _ref_forward(x_ncdhw, params, stride):
    x = jnp.transpose(x_ncdhw, (0, 2, 3, 4, 1)).astype(jnp.float32)

    def conv(x, w, s, p):
        y = jax.lax.conv_general_dilated(
            x.astype(jnp.bfloat16),
            jnp.transpose(w, (2, 3, 4, 1, 0)).astype(jnp.bfloat16),
            window_strides=(s, s, s), padding=[(p, p)] * 3,
            dimension_numbers=("NDHWC", "DHWIO", "NDHWC"),
            preferred_element_type=jnp.float32)
        return y.astype(jnp.bfloat16).astype(jnp.float32)   # mirror bf16 storage

    def bn(y, g, b):
        mu = jnp.mean(y, axis=(0, 1, 2, 3), keepdims=True)
        var = jnp.mean(jnp.square(y - mu), axis=(0, 1, 2, 3), keepdims=True)
        return (y - mu) * jax.lax.rsqrt(var + EPS) * g.reshape(1, 1, 1, 1, -1) \
               + b.reshape(1, 1, 1, 1, -1)

    out1 = jax.nn.relu(bn(conv(x, params["conv1_w"], stride, 1),
                          params["bn1_g"], params["bn1_b"]))
    out = bn(conv(out1, params["conv2_w"], 1, 1), params["bn2_g"], params["bn2_b"])
    if params.get("ds_w") is not None:
        res = bn(conv(x, params["ds_w"], stride, 0),
                 params["ds_bn_g"], params["ds_bn_b"])
    else:
        res = x
    feats = jax.nn.relu(out + res)                           # NDHWC
    feats_ncdhw = jnp.transpose(feats, (0, 4, 1, 2, 3))
    pooled = jnp.mean(feats, axis=(1, 2, 3))
    logits = pooled @ params["fc_w"] + params["fc_b"]
    return jax.nn.sigmoid(logits), feats_ncdhw


# ---------------------------------------------------------------------------
# Deterministic parameter construction
# ---------------------------------------------------------------------------
def make_params(key, in_channels, out_channels, stride):
    ks = jax.random.split(key, 10)
    p = {
        "conv1_w": 0.1 * jax.random.normal(ks[0], (out_channels, in_channels, 3, 3, 3), jnp.float32),
        "bn1_g": 1.0 + 0.1 * jax.random.normal(ks[1], (1, out_channels), jnp.float32),
        "bn1_b": 0.1 * jax.random.normal(ks[2], (1, out_channels), jnp.float32),
        "conv2_w": 0.1 * jax.random.normal(ks[3], (out_channels, out_channels, 3, 3, 3), jnp.float32),
        "bn2_g": 1.0 + 0.1 * jax.random.normal(ks[4], (1, out_channels), jnp.float32),
        "bn2_b": 0.1 * jax.random.normal(ks[5], (1, out_channels), jnp.float32),
        "fc_w": 0.3 * jax.random.normal(ks[8], (out_channels, 1), jnp.float32),
        "fc_b": 0.05 * jax.random.normal(ks[9], (1,), jnp.float32),
        "ds_w": None, "ds_bn_g": None, "ds_bn_b": None,
    }
    if stride != 1 or in_channels != out_channels:
        p["ds_w"] = 0.1 * jax.random.normal(ks[6], (out_channels, in_channels, 1, 1, 1), jnp.float32)
        p["ds_bn_g"] = 1.0 + 0.1 * jax.random.normal(ks[7], (1, out_channels), jnp.float32)
        p["ds_bn_b"] = jnp.zeros((1, out_channels), jnp.float32)
    return p


if __name__ == "__main__":
    key = jax.random.PRNGKey(0)
    k_x, k_p = jax.random.split(key)

    # Small shapes: N=2, Cin=4, D=4, H=W=8; Cout=8, stride=2 (exercises downsample).
    N, Cin, D, H, W = 2, 4, 4, 8, 8
    Cout, stride = 8, 2

    x = jax.random.normal(k_x, (N, Cin, D, H, W), jnp.float32)   # NCDHW (PyTorch)
    params = make_params(k_p, Cin, Cout, stride)

    fwd = jax.jit(functools.partial(discriminator_forward, stride=stride))
    blk = jax.jit(functools.partial(res_block_forward, stride=stride))

    probs = jax.block_until_ready(fwd(x, params))
    feats = jax.block_until_ready(blk(x, params))

    ref_probs, ref_feats = _ref_forward(x, params, stride)
    ref_probs = jax.block_until_ready(ref_probs)
    ref_feats = jax.block_until_ready(ref_feats)

    assert probs.shape == (N, 1), probs.shape
    assert feats.shape == ref_feats.shape, (feats.shape, ref_feats.shape)
    assert bool(jnp.all(jnp.isfinite(probs))) and bool(jnp.all(jnp.isfinite(feats)))
    assert jnp.allclose(feats, ref_feats, rtol=1e-2, atol=1e-2), \
        f"backbone max abs diff {jnp.max(jnp.abs(feats - ref_feats))}"
    assert jnp.allclose(probs, ref_probs, rtol=1e-2, atol=1e-2), \
        f"head max abs diff {jnp.max(jnp.abs(probs - ref_probs))}"

    print("KERNEL_OK")
</pallas_src>

<mosaic_0001>
module attributes {stable_mosaic.version = 11 : i64} {
  func.func @_conv_taps_kernel(%arg0: i32, %arg1: memref<1x2x3x16x128xbf16, #tpu.memory_space<vmem>>, %arg2: memref<3x128x128xbf16, #tpu.memory_space<vmem>>, %arg3: memref<32x128xbf16, #tpu.memory_space<vmem>>, %arg4: memref<1x2x128xf32, #tpu.memory_space<vmem>>) attributes {dimension_semantics = [#tpu.dimension_semantics<parallel>], iteration_bounds = array<i64: 2>, scalar_prefetch = 0 : i64, scratch_operands = 0 : i64, tpu.core_type = #tpu.core_type<tc>, window_params = [{transform_indices = @transform_0, window_bounds = array<i64: 1, 2, 3, 16, 128>}, {pipeline_mode = #tpu.pipeline_mode<synchronous>, transform_indices = @transform_1, window_bounds = array<i64: 3, 128, 128>}, {transform_indices = @transform_2, window_bounds = array<i64: 32, 128>}, {transform_indices = @transform_3, window_bounds = array<i64: 1, 2, 128>}]} {
    %cst = arith.constant 0.000000e+00 : f32
    %0 = vector.broadcast %cst : f32 to vector<32x128xf32>
    %c0 = arith.constant 0 : index
    %c0_0 = arith.constant 0 : index
    %c0_1 = arith.constant 0 : index
    %c0_2 = arith.constant 0 : index
    %c0_3 = arith.constant 0 : index
    %1 = vector.load %arg1[%c0, %c0_0, %c0_1, %c0_2, %c0_3] : memref<1x2x3x16x128xbf16, #tpu.memory_space<vmem>>, vector<1x1x2x16x128xbf16>
    %2 = vector.shape_cast %1 : vector<1x1x2x16x128xbf16> to vector<2x16x128xbf16>
    %3 = vector.shape_cast %2 : vector<2x16x128xbf16> to vector<32x128xbf16>
    %c0_4 = arith.constant 0 : index
    %c0_5 = arith.constant 0 : index
    %c0_6 = arith.constant 0 : index
    %4 = vector.load %arg2[%c0_4, %c0_5, %c0_6] : memref<3x128x128xbf16, #tpu.memory_space<vmem>>, vector<1x128x128xbf16>
    %5 = vector.shape_cast %4 : vector<1x128x128xbf16> to vector<128x128xbf16>
    %cst_7 = arith.constant dense<0.000000e+00> : vector<32x128xf32>
    %6 = tpu.matmul %3, %5, %cst_7 {dimension_numbers = #tpu.dot_dimension_numbers<[1], [0], [0], [1], [0, 0, 1, 1], [], []>} : vector<32x128xbf16>, vector<128x128xbf16>, vector<32x128xf32> -> vector<32x128xf32>
    %7 = arith.addf %0, %6 : vector<32x128xf32>
    %c0_8 = arith.constant 0 : index
    %c1 = arith.constant 1 : index
    %c0_9 = arith.constant 0 : index
    %c0_10 = arith.constant 0 : index
    %c0_11 = arith.constant 0 : index
    %8 = vector.load %arg1[%c0_8, %c1, %c0_9, %c0_10, %c0_11] : memref<1x2x3x16x128xbf16, #tpu.memory_space<vmem>>, vector<1x1x2x16x128xbf16>
    %9 = vector.shape_cast %8 : vector<1x1x2x16x128xbf16> to vector<2x16x128xbf16>
    %10 = vector.shape_cast %9 : vector<2x16x128xbf16> to vector<32x128xbf16>
    %c1_12 = arith.constant 1 : index
    %c0_13 = arith.constant 0 : index
    %c0_14 = arith.constant 0 : index
    %11 = vector.load %arg2[%c1_12, %c0_13, %c0_14] : memref<3x128x128xbf16, #tpu.memory_space<vmem>>, vector<1x128x128xbf16>
    %12 = vector.shape_cast %11 : vector<1x128x128xbf16> to vector<128x128xbf16>
    %cst_15 = arith.constant dense<0.000000e+00> : vector<32x128xf32>
    %13 = tpu.matmul %10, %12, %cst_15 {dimension_numbers = #tpu.dot_dimension_numbers<[1], [0], [0], [1], [0, 0, 1, 1], [], []>} : vector<32x128xbf16>, vector<128x128xbf16>, vector<32x128xf32> -> vector<32x128xf32>
    %14 = arith.addf %7, %13 : vector<32x128xf32>
    %c0_16 = arith.constant 0 : index
    %c0_17 = arith.constant 0 : index
    %c1_18 = arith.constant 1 : index
    %c0_19 = arith.constant 0 : index
    %c0_20 = arith.constant 0 : index
    %15 = vector.load %arg1[%c0_16, %c0_17, %c1_18, %c0_19, %c0_20] : memref<1x2x3x16x128xbf16, #tpu.memory_space<vmem>>, vector<1x1x2x16x128xbf16>
    %16 = vector.shape_cast %15 : vector<1x1x2x16x128xbf16> to vector<2x16x128xbf16>
    %17 = vector.shape_cast %16 : vector<2x16x128xbf16> to vector<32x128xbf16>
    %c2 = arith.constant 2 : index
    %c0_21 = arith.constant 0 : index
    %c0_22 = arith.constant 0 : index
    %18 = vector.load %arg2[%c2, %c0_21, %c0_22] : memref<3x128x128xbf16, #tpu.memory_space<vmem>>, vector<1x128x128xbf16>
    %19 = vector.shape_cast %18 : vector<1x128x128xbf16> to vector<128x128xbf16>
    %cst_23 = arith.constant dense<0.000000e+00> : vector<32x128xf32>
    %20 = tpu.matmul %17, %19, %cst_23 {dimension_numbers = #tpu.dot_dimension_numbers<[1], [0], [0], [1], [0, 0, 1, 1], [], []>} : vector<32x128xbf16>, vector<128x128xbf16>, vector<32x128xf32> -> vector<32x128xf32>
    %21 = arith.addf %14, %20 : vector<32x128xf32>
    %22 = arith.truncf %21 : vector<32x128xf32> to vector<32x128xbf16>
    %c0_24 = arith.constant 0 : index
    %c0_25 = arith.constant 0 : index
    %23 = vector.load %arg3[%c0_24, %c0_25] : memref<32x128xbf16, #tpu.memory_space<vmem>>, vector<32x128xbf16>
    tpu.vector_store %arg3[%c0_24, %c0_25], %22 {strides = array<i32>} : memref<32x128xbf16, #tpu.memory_space<vmem>>, vector<32x128xbf16>,
    %cst_26 = arith.constant dense<0.000000e+00> : vector<128xf32>
    %24 = vector.multi_reduction <add>, %21, %cst_26 [0] : vector<32x128xf32> to vector<128xf32>
    %25 = vector.shape_cast %24 : vector<128xf32> to vector<1x128xf32>
    %26 = arith.mulf %21, %21 : vector<32x128xf32>
    %cst_27 = arith.constant dense<0.000000e+00> : vector<128xf32>
    %27 = vector.multi_reduction <add>, %26, %cst_27 [0] : vector<32x128xf32> to vector<128xf32>
    %28 = vector.shape_cast %27 : vector<128xf32> to vector<1x128xf32>
    %29 = tpu.concatenate %25, %28 in 0 : vector<1x128xf32>, vector<1x128xf32> -> vector<2x128xf32>
    %30 = vector.shape_cast %29 : vector<2x128xf32> to vector<1x2x128xf32>
    %c0_28 = arith.constant 0 : index
    %c0_29 = arith.constant 0 : index
    %c0_30 = arith.constant 0 : index
    %31 = vector.load %arg4[%c0_28, %c0_29, %c0_30] : memref<1x2x128xf32, #tpu.memory_space<vmem>>, vector<1x2x128xf32>
    tpu.vector_store %arg4[%c0_28, %c0_29, %c0_30], %30 {strides = array<i32>} : memref<1x2x128xf32, #tpu.memory_space<vmem>>, vector<1x2x128xf32>,
    return
  }
  func.func @transform_0(%arg0: i32) -> (i32, i32, i32, i32, i32) {
    %c0_i32 = arith.constant 0 : i32
    %c0_i32_0 = arith.constant 0 : i32
    %c0_i32_1 = arith.constant 0 : i32
    %c0_i32_2 = arith.constant 0 : i32
    %c0_i32_3 = arith.constant 0 : i32
    return %arg0, %c0_i32, %c0_i32_0, %c0_i32_1, %c0_i32_2 : i32, i32, i32, i32, i32
  }
  func.func @transform_1(%arg0: i32) -> (i32, i32, i32) {
    %c0_i32 = arith.constant 0 : i32
    %c0_i32_0 = arith.constant 0 : i32
    %c0_i32_1 = arith.constant 0 : i32
    %c0_i32_2 = arith.constant 0 : i32
    return %c0_i32, %c0_i32_0, %c0_i32_1 : i32, i32, i32
  }
  func.func @transform_2(%arg0: i32) -> (i32, i32) {
    %c0_i32 = arith.constant 0 : i32
    %c0_i32_0 = arith.constant 0 : i32
    return %arg0, %c0_i32 : i32, i32
  }
  func.func @transform_3(%arg0: i32) -> (i32, i32, i32) {
    %c0_i32 = arith.constant 0 : i32
    %c0_i32_0 = arith.constant 0 : i32
    %c0_i32_1 = arith.constant 0 : i32
    return %arg0, %c0_i32, %c0_i32_0 : i32, i32, i32
  }
}

module attributes {stable_mosaic.version = 11 : i64} {
  func.func @_conv_taps_kernel(%arg0: i32, %arg1: memref<1x1x4x16x128xbf16, #tpu.memory_space<vmem>>, %arg2: memref<3x128x128xbf16, #tpu.memory_space<vmem>>, %arg3: memref<32x128xbf16, #tpu.memory_space<vmem>>, %arg4: memref<1x2x128xf32, #tpu.memory_space<vmem>>) attributes {dimension_semantics = [#tpu.dimension_semantics<parallel>], iteration_bounds = array<i64: 2>, scalar_prefetch = 0 : i64, scratch_operands = 0 : i64, tpu.core_type = #tpu.core_type<tc>, window_params = [{transform_indices = @transform_0, window_bounds = array<i64: 1, 1, 4, 16, 128>}, {pipeline_mode = #tpu.pipeline_mode<synchronous>, transform_indices = @transform_1, window_bounds = array<i64: 3, 128, 128>}, {transform_indices = @transform_2, window_bounds = array<i64: 32, 128>}, {transform_indices = @transform_3, window_bounds = array<i64: 1, 2, 128>}]} {
    %cst = arith.constant 0.000000e+00 : f32
    %0 = vector.broadcast %cst : f32 to vector<32x128xf32>
    %c0 = arith.constant 0 : index
    %c0_0 = arith.constant 0 : index
    %c0_1 = arith.constant 0 : index
    %c0_2 = arith.constant 0 : index
    %c0_3 = arith.constant 0 : index
    %1 = vector.load %arg1[%c0, %c0_0, %c0_1, %c0_2, %c0_3] : memref<1x1x4x16x128xbf16, #tpu.memory_space<vmem>>, vector<1x1x2x16x128xbf16>
    %2 = vector.shape_cast %1 : vector<1x1x2x16x128xbf16> to vector<2x16x128xbf16>
    %3 = vector.shape_cast %2 : vector<2x16x128xbf16> to vector<32x128xbf16>
    %c0_4 = arith.constant 0 : index
    %c0_5 = arith.constant 0 : index
    %c0_6 = arith.constant 0 : index
    %4 = vector.load %arg2[%c0_4, %c0_5, %c0_6] : memref<3x128x128xbf16, #tpu.memory_space<vmem>>, vector<1x128x128xbf16>
    %5 = vector.shape_cast %4 : vector<1x128x128xbf16> to vector<128x128xbf16>
    %cst_7 = arith.constant dense<0.000000e+00> : vector<32x128xf32>
    %6 = tpu.matmul %3, %5, %cst_7 {dimension_numbers = #tpu.dot_dimension_numbers<[1], [0], [0], [1], [0, 0, 1, 1], [], []>} : vector<32x128xbf16>, vector<128x128xbf16>, vector<32x128xf32> -> vector<32x128xf32>
    %7 = arith.addf %0, %6 : vector<32x128xf32>
    %c0_8 = arith.constant 0 : index
    %c0_9 = arith.constant 0 : index
    %c1 = arith.constant 1 : index
    %c0_10 = arith.constant 0 : index
    %c0_11 = arith.constant 0 : index
    %8 = vector.load %arg1[%c0_8, %c0_9, %c1, %c0_10, %c0_11] : memref<1x1x4x16x128xbf16, #tpu.memory_space<vmem>>, vector<1x1x2x16x128xbf16>
    %9 = vector.shape_cast %8 : vector<1x1x2x16x128xbf16> to vector<2x16x128xbf16>
    %10 = vector.shape_cast %9 : vector<2x16x128xbf16> to vector<32x128xbf16>
    %c1_12 = arith.constant 1 : index
    %c0_13 = arith.constant 0 : index
    %c0_14 = arith.constant 0 : index
    %11 = vector.load %arg2[%c1_12, %c0_13, %c0_14] : memref<3x128x128xbf16, #tpu.memory_space<vmem>>, vector<1x128x128xbf16>
    %12 = vector.shape_cast %11 : vector<1x128x128xbf16> to vector<128x128xbf16>
    %cst_15 = arith.constant dense<0.000000e+00> : vector<32x128xf32>
    %13 = tpu.matmul %10, %12, %cst_15 {dimension_numbers = #tpu.dot_dimension_numbers<[1], [0], [0], [1], [0, 0, 1, 1], [], []>} : vector<32x128xbf16>, vector<128x128xbf16>, vector<32x128xf32> -> vector<32x128xf32>
    %14 = arith.addf %7, %13 : vector<32x128xf32>
    %c0_16 = arith.constant 0 : index
    %c0_17 = arith.constant 0 : index
    %c2 = arith.constant 2 : index
    %c0_18 = arith.constant 0 : index
    %c0_19 = arith.constant 0 : index
    %15 = vector.load %arg1[%c0_16, %c0_17, %c2, %c0_18, %c0_19] : memref<1x1x4x16x128xbf16, #tpu.memory_space<vmem>>, vector<1x1x2x16x128xbf16>
    %16 = vector.shape_cast %15 : vector<1x1x2x16x128xbf16> to vector<2x16x128xbf16>
    %17 = vector.shape_cast %16 : vector<2x16x128xbf16> to vector<32x128xbf16>
    %c2_20 = arith.constant 2 : index
    %c0_21 = arith.constant 0 : index
    %c0_22 = arith.constant 0 : index
    %18 = vector.load %arg2[%c2_20, %c0_21, %c0_22] : memref<3x128x128xbf16, #tpu.memory_space<vmem>>, vector<1x128x128xbf16>
    %19 = vector.shape_cast %18 : vector<1x128x128xbf16> to vector<128x128xbf16>
    %cst_23 = arith.constant dense<0.000000e+00> : vector<32x128xf32>
    %20 = tpu.matmul %17, %19, %cst_23 {dimension_numbers = #tpu.dot_dimension_numbers<[1], [0], [0], [1], [0, 0, 1, 1], [], []>} : vector<32x128xbf16>, vector<128x128xbf16>, vector<32x128xf32> -> vector<32x128xf32>
    %21 = arith.addf %14, %20 : vector<32x128xf32>
    %22 = arith.truncf %21 : vector<32x128xf32> to vector<32x128xbf16>
    %c0_24 = arith.constant 0 : index
    %c0_25 = arith.constant 0 : index
    %23 = vector.load %arg3[%c0_24, %c0_25] : memref<32x128xbf16, #tpu.memory_space<vmem>>, vector<32x128xbf16>
    tpu.vector_store %arg3[%c0_24, %c0_25], %22 {strides = array<i32>} : memref<32x128xbf16, #tpu.memory_space<vmem>>, vector<32x128xbf16>,
    %cst_26 = arith.constant dense<0.000000e+00> : vector<128xf32>
    %24 = vector.multi_reduction <add>, %21, %cst_26 [0] : vector<32x128xf32> to vector<128xf32>
    %25 = vector.shape_cast %24 : vector<128xf32> to vector<1x128xf32>
    %26 = arith.mulf %21, %21 : vector<32x128xf32>
    %cst_27 = arith.constant dense<0.000000e+00> : vector<128xf32>
    %27 = vector.multi_reduction <add>, %26, %cst_27 [0] : vector<32x128xf32> to vector<128xf32>
    %28 = vector.shape_cast %27 : vector<128xf32> to vector<1x128xf32>
    %29 = tpu.concatenate %25, %28 in 0 : vector<1x128xf32>, vector<1x128xf32> -> vector<2x128xf32>
    %30 = vector.shape_cast %29 : vector<2x128xf32> to vector<1x2x128xf32>
    %c0_28 = arith.constant 0 : index
    %c0_29 = arith.constant 0 : index
    %c0_30 = arith.constant 0 : index
    %31 = vector.load %arg4[%c0_28, %c0_29, %c0_30] : memref<1x2x128xf32, #tpu.memory_space<vmem>>, vector<1x2x128xf32>
    tpu.vector_store %arg4[%c0_28, %c0_29, %c0_30], %30 {strides = array<i32>} : memref<1x2x128xf32, #tpu.memory_space<vmem>>, vector<1x2x128xf32>,
    return
  }
  func.func @transform_0(%arg0: i32) -> (i32, i32, i32, i32, i32) {
    %c0_i32 = arith.constant 0 : i32
    %c0_i32_0 = arith.constant 0 : i32
    %c0_i32_1 = arith.constant 0 : i32
    %c0_i32_2 = arith.constant 0 : i32
    %c0_i32_3 = arith.constant 0 : i32
    return %arg0, %c0_i32, %c0_i32_0, %c0_i32_1, %c0_i32_2 : i32, i32, i32, i32, i32
  }
  func.func @transform_1(%arg0: i32) -> (i32, i32, i32) {
    %c0_i32 = arith.constant 0 : i32
    %c0_i32_0 = arith.constant 0 : i32
    %c0_i32_1 = arith.constant 0 : i32
    %c0_i32_2 = arith.constant 0 : i32
    return %c0_i32, %c0_i32_0, %c0_i32_1 : i32, i32, i32
  }
  func.func @transform_2(%arg0: i32) -> (i32, i32) {
    %c0_i32 = arith.constant 0 : i32
    %c0_i32_0 = arith.constant 0 : i32
    return %arg0, %c0_i32 : i32, i32
  }
  func.func @transform_3(%arg0: i32) -> (i32, i32, i32) {
    %c0_i32 = arith.constant 0 : i32
    %c0_i32_0 = arith.constant 0 : i32
    %c0_i32_1 = arith.constant 0 : i32
    return %arg0, %c0_i32, %c0_i32_0 : i32, i32, i32
  }
}

module attributes {stable_mosaic.version = 11 : i64} {
  func.func @_conv_taps_kernel(%arg0: i32, %arg1: memref<1x1x2x16x128xbf16, #tpu.memory_space<vmem>>, %arg2: memref<1x128x128xbf16, #tpu.memory_space<vmem>>, %arg3: memref<32x128xbf16, #tpu.memory_space<vmem>>, %arg4: memref<1x2x128xf32, #tpu.memory_space<vmem>>) attributes {dimension_semantics = [#tpu.dimension_semantics<parallel>], iteration_bounds = array<i64: 2>, scalar_prefetch = 0 : i64, scratch_operands = 0 : i64, tpu.core_type = #tpu.core_type<tc>, window_params = [{transform_indices = @transform_0, window_bounds = array<i64: 1, 1, 2, 16, 128>}, {pipeline_mode = #tpu.pipeline_mode<synchronous>, transform_indices = @transform_1, window_bounds = array<i64: 1, 128, 128>}, {transform_indices = @transform_2, window_bounds = array<i64: 32, 128>}, {transform_indices = @transform_3, window_bounds = array<i64: 1, 2, 128>}]} {
    %cst = arith.constant 0.000000e+00 : f32
    %0 = vector.broadcast %cst : f32 to vector<32x128xf32>
    %c0 = arith.constant 0 : index
    %c0_0 = arith.constant 0 : index
    %c0_1 = arith.constant 0 : index
    %c0_2 = arith.constant 0 : index
    %c0_3 = arith.constant 0 : index
    %1 = vector.load %arg1[%c0, %c0_0, %c0_1, %c0_2, %c0_3] : memref<1x1x2x16x128xbf16, #tpu.memory_space<vmem>>, vector<1x1x2x16x128xbf16>
    %2 = vector.shape_cast %1 : vector<1x1x2x16x128xbf16> to vector<2x16x128xbf16>
    %3 = vector.shape_cast %2 : vector<2x16x128xbf16> to vector<32x128xbf16>
    %c0_4 = arith.constant 0 : index
    %c0_5 = arith.constant 0 : index
    %c0_6 = arith.constant 0 : index
    %4 = vector.load %arg2[%c0_4, %c0_5, %c0_6] : memref<1x128x128xbf16, #tpu.memory_space<vmem>>, vector<1x128x128xbf16>
    %5 = vector.shape_cast %4 : vector<1x128x128xbf16> to vector<128x128xbf16>
    %cst_7 = arith.constant dense<0.000000e+00> : vector<32x128xf32>
    %6 = tpu.matmul %3, %5, %cst_7 {dimension_numbers = #tpu.dot_dimension_numbers<[1], [0], [0], [1], [0, 0, 1, 1], [], []>} : vector<32x128xbf16>, vector<128x128xbf16>, vector<32x128xf32> -> vector<32x128xf32>
    %7 = arith.addf %0, %6 : vector<32x128xf32>
    %8 = arith.truncf %7 : vector<32x128xf32> to vector<32x128xbf16>
    %c0_8 = arith.constant 0 : index
    %c0_9 = arith.constant 0 : index
    %9 = vector.load %arg3[%c0_8, %c0_9] : memref<32x128xbf16, #tpu.memory_space<vmem>>, vector<32x128xbf16>
    tpu.vector_store %arg3[%c0_8, %c0_9], %8 {strides = array<i32>} : memref<32x128xbf16, #tpu.memory_space<vmem>>, vector<32x128xbf16>,
    %cst_10 = arith.constant dense<0.000000e+00> : vector<128xf32>
    %10 = vector.multi_reduction <add>, %7, %cst_10 [0] : vector<32x128xf32> to vector<128xf32>
    %11 = vector.shape_cast %10 : vector<128xf32> to vector<1x128xf32>
    %12 = arith.mulf %7, %7 : vector<32x128xf32>
    %cst_11 = arith.constant dense<0.000000e+00> : vector<128xf32>
    %13 = vector.multi_reduction <add>, %12, %cst_11 [0] : vector<32x128xf32> to vector<128xf32>
    %14 = vector.shape_cast %13 : vector<128xf32> to vector<1x128xf32>
    %15 = tpu.concatenate %11, %14 in 0 : vector<1x128xf32>, vector<1x128xf32> -> vector<2x128xf32>
    %16 = vector.shape_cast %15 : vector<2x128xf32> to vector<1x2x128xf32>
    %c0_12 = arith.constant 0 : index
    %c0_13 = arith.constant 0 : index
    %c0_14 = arith.constant 0 : index
    %17 = vector.load %arg4[%c0_12, %c0_13, %c0_14] : memref<1x2x128xf32, #tpu.memory_space<vmem>>, vector<1x2x128xf32>
    tpu.vector_store %arg4[%c0_12, %c0_13, %c0_14], %16 {strides = array<i32>} : memref<1x2x128xf32, #tpu.memory_space<vmem>>, vector<1x2x128xf32>,
    return
  }
  func.func @transform_0(%arg0: i32) -> (i32, i32, i32, i32, i32) {
    %c0_i32 = arith.constant 0 : i32
    %c0_i32_0 = arith.constant 0 : i32
    %c0_i32_1 = arith.constant 0 : i32
    %c0_i32_2 = arith.constant 0 : i32
    %c0_i32_3 = arith.constant 0 : i32
    return %arg0, %c0_i32, %c0_i32_0, %c0_i32_1, %c0_i32_2 : i32, i32, i32, i32, i32
  }
  func.func @transform_1(%arg0: i32) -> (i32, i32, i32) {
    %c0_i32 = arith.constant 0 : i32
    %c0_i32_0 = arith.constant 0 : i32
    %c0_i32_1 = arith.constant 0 : i32
    %c0_i32_2 = arith.constant 0 : i32
    return %c0_i32, %c0_i32_0, %c0_i32_1 : i32, i32, i32
  }
  func.func @transform_2(%arg0: i32) -> (i32, i32) {
    %c0_i32 = arith.constant 0 : i32
    %c0_i32_0 = arith.constant 0 : i32
    return %arg0, %c0_i32 : i32, i32
  }
  func.func @transform_3(%arg0: i32) -> (i32, i32, i32) {
    %c0_i32 = arith.constant 0 : i32
    %c0_i32_0 = arith.constant 0 : i32
    %c0_i32_1 = arith.constant 0 : i32
    return %arg0, %c0_i32, %c0_i32_0 : i32, i32, i32
  }
}

module attributes {stable_mosaic.version = 11 : i64} {
  func.func @_bn2_dsbn_relu_kernel(%arg0: i32, %arg1: memref<32x128xbf16, #tpu.memory_space<vmem>>, %arg2: memref<2x128xf32, #tpu.memory_space<vmem>>, %arg3: memref<1x128xf32, #tpu.memory_space<vmem>>, %arg4: memref<1x128xf32, #tpu.memory_space<vmem>>, %arg5: memref<32x128xbf16, #tpu.memory_space<vmem>>, %arg6: memref<2x128xf32, #tpu.memory_space<vmem>>, %arg7: memref<1x128xf32, #tpu.memory_space<vmem>>, %arg8: memref<1x128xf32, #tpu.memory_space<vmem>>, %arg9: memref<32x128xf32, #tpu.memory_space<vmem>>, %arg10: memref<1x1x128xf32, #tpu.memory_space<vmem>>) attributes {dimension_semantics = [#tpu.dimension_semantics<parallel>], iteration_bounds = array<i64: 2>, scalar_prefetch = 0 : i64, scratch_operands = 0 : i64, tpu.core_type = #tpu.core_type<tc>, window_params = [{transform_indices = @transform_0, window_bounds = array<i64: 32, 128>}, {pipeline_mode = #tpu.pipeline_mode<synchronous>, transform_indices = @transform_1, window_bounds = array<i64: 2, 128>}, {pipeline_mode = #tpu.pipeline_mode<synchronous>, transform_indices = @transform_2, window_bounds = array<i64: 1, 128>}, {pipeline_mode = #tpu.pipeline_mode<synchronous>, transform_indices = @transform_3, window_bounds = array<i64: 1, 128>}, {transform_indices = @transform_4, window_bounds = array<i64: 32, 128>}, {pipeline_mode = #tpu.pipeline_mode<synchronous>, transform_indices = @transform_5, window_bounds = array<i64: 2, 128>}, {pipeline_mode = #tpu.pipeline_mode<synchronous>, transform_indices = @transform_6, window_bounds = array<i64: 1, 128>}, {pipeline_mode = #tpu.pipeline_mode<synchronous>, transform_indices = @transform_7, window_bounds = array<i64: 1, 128>}, {transform_indices = @transform_8, window_bounds = array<i64: 32, 128>}, {transform_indices = @transform_9, window_bounds = array<i64: 1, 1, 128>}]} {
    %c0 = arith.constant 0 : index
    %c0_0 = arith.constant 0 : index
    %0 = vector.load %arg1[%c0, %c0_0] : memref<32x128xbf16, #tpu.memory_space<vmem>>, vector<32x128xbf16>
    %1 = arith.extf %0 : vector<32x128xbf16> to vector<32x128xf32>
    %c0_1 = arith.constant 0 : index
    %c0_2 = arith.constant 0 : index
    %2 = vector.load %arg2[%c0_1, %c0_2] : memref<2x128xf32, #tpu.memory_space<vmem>>, vector<2x128xf32>
    %c0_3 = arith.constant 0 : index
    %c0_4 = arith.constant 0 : index
    %3 = vector.load %arg3[%c0_3, %c0_4] : memref<1x128xf32, #tpu.memory_space<vmem>>, vector<1x128xf32>
    %c0_5 = arith.constant 0 : index
    %c0_6 = arith.constant 0 : index
    %4 = vector.load %arg4[%c0_5, %c0_6] : memref<1x128xf32, #tpu.memory_space<vmem>>, vector<1x128xf32>
    %5 = vector.extract_strided_slice %2 {offsets = [0, 0], sizes = [1, 128], strides = [1, 1]} : vector<2x128xf32> to vector<1x128xf32>
    %cst = arith.constant 1.562500e-02 : f32
    %6 = vector.broadcast %cst : f32 to vector<1x128xf32>
    %7 = arith.mulf %5, %6 : vector<1x128xf32>
    %8 = vector.extract_strided_slice %2 {offsets = [1, 0], sizes = [1, 128], strides = [1, 1]} : vector<2x128xf32> to vector<1x128xf32>
    %cst_7 = arith.constant 1.562500e-02 : f32
    %9 = vector.broadcast %cst_7 : f32 to vector<1x128xf32>
    %10 = arith.mulf %8, %9 : vector<1x128xf32>
    %11 = arith.mulf %7, %7 : vector<1x128xf32>
    %12 = arith.subf %10, %11 : vector<1x128xf32>
    %cst_8 = arith.constant 0.000000e+00 : f32
    %13 = vector.broadcast %cst_8 : f32 to vector<1x128xf32>
    %14 = arith.maximumf %12, %13 : vector<1x128xf32>
    %cst_9 = arith.constant 9.99999974E-6 : f32
    %15 = vector.broadcast %cst_9 : f32 to vector<1x128xf32>
    %16 = arith.addf %14, %15 : vector<1x128xf32>
    %17 = math.rsqrt %16 : vector<1x128xf32>
    %18 = vector.broadcast %7 : vector<1x128xf32> to vector<32x128xf32>
    %19 = arith.subf %1, %18 : vector<32x128xf32>
    %20 = arith.mulf %17, %3 : vector<1x128xf32>
    %21 = vector.broadcast %20 : vector<1x128xf32> to vector<32x128xf32>
    %22 = arith.mulf %19, %21 : vector<32x128xf32>
    %23 = vector.broadcast %4 : vector<1x128xf32> to vector<32x128xf32>
    %24 = arith.addf %22, %23 : vector<32x128xf32>
    %c0_10 = arith.constant 0 : index
    %c0_11 = arith.constant 0 : index
    %25 = vector.load %arg5[%c0_10, %c0_11] : memref<32x128xbf16, #tpu.memory_space<vmem>>, vector<32x128xbf16>
    %26 = arith.extf %25 : vector<32x128xbf16> to vector<32x128xf32>
    %c0_12 = arith.constant 0 : index
    %c0_13 = arith.constant 0 : index
    %27 = vector.load %arg6[%c0_12, %c0_13] : memref<2x128xf32, #tpu.memory_space<vmem>>, vector<2x128xf32>
    %c0_14 = arith.constant 0 : index
    %c0_15 = arith.constant 0 : index
    %28 = vector.load %arg7[%c0_14, %c0_15] : memref<1x128xf32, #tpu.memory_space<vmem>>, vector<1x128xf32>
    %c0_16 = arith.constant 0 : index
    %c0_17 = arith.constant 0 : index
    %29 = vector.load %arg8[%c0_16, %c0_17] : memref<1x128xf32, #tpu.memory_space<vmem>>, vector<1x128xf32>
    %30 = vector.extract_strided_slice %27 {offsets = [0, 0], sizes = [1, 128], strides = [1, 1]} : vector<2x128xf32> to vector<1x128xf32>
    %cst_18 = arith.constant 1.562500e-02 : f32
    %31 = vector.broadcast %cst_18 : f32 to vector<1x128xf32>
    %32 = arith.mulf %30, %31 : vector<1x128xf32>
    %33 = vector.extract_strided_slice %27 {offsets = [1, 0], sizes = [1, 128], strides = [1, 1]} : vector<2x128xf32> to vector<1x128xf32>
    %cst_19 = arith.constant 1.562500e-02 : f32
    %34 = vector.broadcast %cst_19 : f32 to vector<1x128xf32>
    %35 = arith.mulf %33, %34 : vector<1x128xf32>
    %36 = arith.mulf %32, %32 : vector<1x128xf32>
    %37 = arith.subf %35, %36 : vector<1x128xf32>
    %cst_20 = arith.constant 0.000000e+00 : f32
    %38 = vector.broadcast %cst_20 : f32 to vector<1x128xf32>
    %39 = arith.maximumf %37, %38 : vector<1x128xf32>
    %cst_21 = arith.constant 9.99999974E-6 : f32
    %40 = vector.broadcast %cst_21 : f32 to vector<1x128xf32>
    %41 = arith.addf %39, %40 : vector<1x128xf32>
    %42 = math.rsqrt %41 : vector<1x128xf32>
    %43 = vector.broadcast %32 : vector<1x128xf32> to vector<32x128xf32>
    %44 = arith.subf %26, %43 : vector<32x128xf32>
    %45 = arith.mulf %42, %28 : vector<1x128xf32>
    %46 = vector.broadcast %45 : vector<1x128xf32> to vector<32x128xf32>
    %47 = arith.mulf %44, %46 : vector<32x128xf32>
    %48 = vector.broadcast %29 : vector<1x128xf32> to vector<32x128xf32>
    %49 = arith.addf %47, %48 : vector<32x128xf32>
    %50 = arith.addf %24, %49 : vector<32x128xf32>
    %cst_22 = arith.constant 0.000000e+00 : f32
    %51 = vector.broadcast %cst_22 : f32 to vector<32x128xf32>
    %52 = arith.maximumf %50, %51 : vector<32x128xf32>
    %c0_23 = arith.constant 0 : index
    %c0_24 = arith.constant 0 : index
    %53 = vector.load %arg9[%c0_23, %c0_24] : memref<32x128xf32, #tpu.memory_space<vmem>>, vector<32x128xf32>
    tpu.vector_store %arg9[%c0_23, %c0_24], %52 {strides = array<i32>} : memref<32x128xf32, #tpu.memory_space<vmem>>, vector<32x128xf32>,
    %cst_25 = arith.constant dense<0.000000e+00> : vector<128xf32>
    %54 = vector.multi_reduction <add>, %52, %cst_25 [0] : vector<32x128xf32> to vector<128xf32>
    %55 = vector.shape_cast %54 : vector<128xf32> to vector<1x128xf32>
    %56 = vector.shape_cast %55 : vector<1x128xf32> to vector<1x1x128xf32>
    %c0_26 = arith.constant 0 : index
    %c0_27 = arith.constant 0 : index
    %c0_28 = arith.constant 0 : index
    %57 = vector.load %arg10[%c0_26, %c0_27, %c0_28] : memref<1x1x128xf32, #tpu.memory_space<vmem>>, vector<1x1x128xf32>
    tpu.vector_store %arg10[%c0_26, %c0_27, %c0_28], %56 {strides = array<i32>} : memref<1x1x128xf32, #tpu.memory_space<vmem>>, vector<1x1x128xf32>,
    return
  }
  func.func @transform_0(%arg0: i32) -> (i32, i32) {
    %c0_i32 = arith.constant 0 : i32
    %c0_i32_0 = arith.constant 0 : i32
    return %arg0, %c0_i32 : i32, i32
  }
  func.func @transform_1(%arg0: i32) -> (i32, i32) {
    %c0_i32 = arith.constant 0 : i32
    %c0_i32_0 = arith.constant 0 : i32
    %c0_i32_1 = arith.constant 0 : i32
    return %c0_i32, %c0_i32_0 : i32, i32
  }
  func.func @transform_2(%arg0: i32) -> (i32, i32) {
    %c0_i32 = arith.constant 0 : i32
    %c0_i32_0 = arith.constant 0 : i32
    %c0_i32_1 = arith.constant 0 : i32
    return %c0_i32, %c0_i32_0 : i32, i32
  }
  func.func @transform_3(%arg0: i32) -> (i32, i32) {
    %c0_i32 = arith.constant 0 : i32
    %c0_i32_0 = arith.constant 0 : i32
    %c0_i32_1 = arith.constant 0 : i32
    return %c0_i32, %c0_i32_0 : i32, i32
  }
  func.func @transform_4(%arg0: i32) -> (i32, i32) {
    %c0_i32 = arith.constant 0 : i32
    %c0_i32_0 = arith.constant 0 : i32
    return %arg0, %c0_i32 : i32, i32
  }
  func.func @transform_5(%arg0: i32) -> (i32, i32) {
    %c0_i32 = arith.constant 0 : i32
    %c0_i32_0 = arith.constant 0 : i32
    %c0_i32_1 = arith.constant 0 : i32
    return %c0_i32, %c0_i32_0 : i32, i32
  }
  func.func @transform_6(%arg0: i32) -> (i32, i32) {
    %c0_i32 = arith.constant 0 : i32
    %c0_i32_0 = arith.constant 0 : i32
    %c0_i32_1 = arith.constant 0 : i32
    return %c0_i32, %c0_i32_0 : i32, i32
  }
  func.func @transform_7(%arg0: i32) -> (i32, i32) {
    %c0_i32 = arith.constant 0 : i32
    %c0_i32_0 = arith.constant 0 : i32
    %c0_i32_1 = arith.constant 0 : i32
    return %c0_i32, %c0_i32_0 : i32, i32
  }
  func.func @transform_8(%arg0: i32) -> (i32, i32) {
    %c0_i32 = arith.constant 0 : i32
    %c0_i32_0 = arith.constant 0 : i32
    return %arg0, %c0_i32 : i32, i32
  }
  func.func @transform_9(%arg0: i32) -> (i32, i32, i32) {
    %c0_i32 = arith.constant 0 : i32
    %c0_i32_0 = arith.constant 0 : i32
    %c0_i32_1 = arith.constant 0 : i32
    return %arg0, %c0_i32, %c0_i32_0 : i32, i32, i32
  }
}

module attributes {stable_mosaic.version = 11 : i64} {
  func.func @_head_kernel(%arg0: memref<2x128xf32, #tpu.memory_space<vmem>>, %arg1: memref<128x128xf32, #tpu.memory_space<vmem>>, %arg2: memref<1x128xf32, #tpu.memory_space<vmem>>, %arg3: memref<2x128xf32, #tpu.memory_space<vmem>>) attributes {dimension_semantics = [], scalar_prefetch = 0 : i64, scratch_operands = 0 : i64, tpu.core_type = #tpu.core_type<tc>} {
    %c0 = arith.constant 0 : index
    %c0_0 = arith.constant 0 : index
    %0 = vector.load %arg0[%c0, %c0_0] : memref<2x128xf32, #tpu.memory_space<vmem>>, vector<2x128xf32>
    %c0_1 = arith.constant 0 : index
    %c0_2 = arith.constant 0 : index
    %1 = vector.load %arg1[%c0_1, %c0_2] : memref<128x128xf32, #tpu.memory_space<vmem>>, vector<128x128xf32>
    %cst = arith.constant dense<0.000000e+00> : vector<2x128xf32>
    %2 = tpu.matmul %0, %1, %cst {dimension_numbers = #tpu.dot_dimension_numbers<[1], [0], [0], [1], [0, 0, 1, 1], [], []>} : vector<2x128xf32>, vector<128x128xf32>, vector<2x128xf32> -> vector<2x128xf32>
    %c0_3 = arith.constant 0 : index
    %c0_4 = arith.constant 0 : index
    %3 = vector.load %arg2[%c0_3, %c0_4] : memref<1x128xf32, #tpu.memory_space<vmem>>, vector<1x128xf32>
    %4 = vector.broadcast %3 : vector<1x128xf32> to vector<2x128xf32>
    %5 = arith.addf %2, %4 : vector<2x128xf32>
    %6 = arith.negf %5 : vector<2x128xf32>
    %7 = math.exp %6 : vector<2x128xf32>
    %cst_5 = arith.constant 1.000000e+00 : f32
    %8 = vector.broadcast %cst_5 : f32 to vector<2x128xf32>
    %9 = arith.addf %8, %7 : vector<2x128xf32>
    %10 = arith.divf %8, %9 : vector<2x128xf32>
    %c0_6 = arith.constant 0 : index
    %c0_7 = arith.constant 0 : index
    %11 = vector.load %arg3[%c0_6, %c0_7] : memref<2x128xf32, #tpu.memory_space<vmem>>, vector<2x128xf32>
    tpu.vector_store %arg3[%c0_6, %c0_7], %10 {strides = array<i32>} : memref<2x128xf32, #tpu.memory_space<vmem>>, vector<2x128xf32>,
    return
  }
}

</mosaic_0001>

<bundles_post_ra>
// kernel: discriminator_forward.5
= control target key start
LH: loop header
LB: loop body
LE: loop exit
PB: predicated region body
PF: predicated region fallthrough
CT: control target
= control target key end

     0   :  { %s976_s12 = smov 0   ;;  %s1085_s0 = inlined_call_operand.vmem [shape: bf16[2,2,3,16,128], index: 0, kind: input, shape index: {}]   ;;  %s1086_s1 = inlined_call_operand.vmem [shape: bf16[3,128,128], index: 1, kind: input, shape index: {}]   ;;  %s1087_s2 = inlined_call_operand.vmem [shape: bf16[64,128], index: 2, kind: output, shape index: {0}]   ;;  %s1088_s3 = inlined_call_operand.vmem [shape: f32[2,2,128], index: 3, kind: output, shape index: {1}]  }
   0x1 LB: > { %s982_s13 = sadd.s32 4294967295, %s954_s12   ;;  %p715_p0 = scmp.ge.s32.totalorder %s954_s12, 1  ;;  %s954_s12 = sphi %s976_s12, %s14_s12  }
   0x2   : > { %p140_p1 = scmp.lt.s32.totalorder %s954_s12, 3 }
   0x4   : > { %p141_p2 = pnand %p715_p0, %p140_p1 }
   0x5   : > { %v918_v0 = vld [vmem:[%s1086_s1] sm:$0xff] (!%p141_p2)   ;;  %p168_p3 = scmp.lt.s32.totalorder (!%p141_p2), %s982_s13, 1  ;;  %v919_v1 = vld [vmem:[%s1086_s1 + $0x8] sm:$0xff] (!%p141_p2)   ;;  %v920_v2 = vld [vmem:[%s1086_s1 + $0x10] sm:$0xff] (!%p141_p2)   ;;  %s717_s20 = sshll.u32 (!%p141_p2), %s982_s13, 2  ;;  %vm621_vm0 = vcmask (!%p141_p2), 1040384  }
   0x6   : > { %144 = sbr.rel (%p141_p2) target bundleno = 309 (0x135), region = 28  ;;  %861 = vmatprep.subr.bf16.mxu0 (!%p141_p2), %v918_v0  ;;  %v921_v3 = vld [vmem:[%s1086_s1 + $0x18] sm:$0xff] (!%p141_p2)   ;;  %v926_v4 = vld [vmem:[%s1086_s1 + $0x40] sm:$0xff] (!%p141_p2)   ;;  %v929_v6 = vld [vmem:[%s1086_s1 + $0x48] sm:$0xff] (!%p141_p2)   ;;  %p174_p4 = scmp.lt.s32.totalorder (!%p141_p2), %s717_s20, 7 }
   0x7   : > { %862 = vmatpush3.bf16.msra.mxu0 (!%p141_p2), %v918_v0  ;;  %841 = vmatprep.subr.bf16.mxu1 (!%p141_p2), %v926_v4  ;;  %v922_v7 = vld [vmem:[%s1086_s1 + $0x20] sm:$0xff] (!%p141_p2)   ;;  %v932_v8 = vld [vmem:[%s1086_s1 + $0x50] sm:$0xff] (!%p141_p2)   ;;  %v923_v9 = vld [vmem:[%s1086_s1 + $0x28] sm:$0xff] (!%p141_p2)  }
   0x8   : > { %863 = vmatprep.subr.bf16.mxu0 (!%p141_p2), %v919_v1  ;;  %842 = vmatpush3.bf16.msra.mxu1 (!%p141_p2), %v926_v4  ;;  %v934_v10 = vld [vmem:[%s1086_s1 + $0x58] sm:$0xff] (!%p141_p2)   ;;  %v924_v11 = vld [vmem:[%s1086_s1 + $0x30] sm:$0xff] (!%p141_p2)   ;;  %v936_v12 = vld [vmem:[%s1086_s1 + $0x60] sm:$0xff] (!%p141_p2)  }
   0x9   : > { %843 = vmatprep.subr.bf16.mxu1 (!%p141_p2), %v929_v6  ;;  %v925_v13 = vld [vmem:[%s1086_s1 + $0x38] sm:$0xff] (!%p141_p2)   ;;  %v938_v14 = vld [vmem:[%s1086_s1 + $0x68] sm:$0xff] (!%p141_p2)   ;;  %v928_v16 = vld [vmem:[%s1086_s1 + $0x80] sm:$0xff] (!%p141_p2)  }
   0xa   : > { %v940_v17 = vld [vmem:[%s1086_s1 + $0x70] sm:$0xff] (!%p141_p2)   ;;  %v931_v19 = vld [vmem:[%s1086_s1 + $0x88] sm:$0xff] (!%p141_p2)   ;;  %v942_v20 = vld [vmem:[%s1086_s1 + $0x78] sm:$0xff] (!%p141_p2)  }
   0xb   : > { %864 = vmatpush3.bf16.msra.mxu0 (!%p141_p2), %v919_v1  ;;  %v933_v22 = vld [vmem:[%s1086_s1 + $0x90] sm:$0xff] (!%p141_p2)   ;;  %v935_v24 = vld [vmem:[%s1086_s1 + $0x98] sm:$0xff] (!%p141_p2)   ;;  %v937_v25 = vld [vmem:[%s1086_s1 + $0xa0] sm:$0xff] (!%p141_p2)  }
   0xc   : > { %865 = vmatprep.subr.bf16.mxu0 (!%p141_p2), %v920_v2  ;;  %844 = vmatpush3.bf16.msra.mxu1 (!%p141_p2), %v929_v6  ;;  %v939_v26 = vld [vmem:[%s1086_s1 + $0xa8] sm:$0xff] (!%p141_p2)   ;;  %v941_v27 = vld [vmem:[%s1086_s1 + $0xb0] sm:$0xff] (!%p141_p2)   ;;  %v944_v28 = vld [vmem:[%s1086_s1 + $0xb8] sm:$0xff] (!%p141_p2)  }
   0xd   : > { %s994_s18 = scalar_select %p168_p3, %s982_s13, 1  ;;  %845 = vmatprep.subr.bf16.mxu1 %v932_v8 }
   0xe   : > { %s1090_s20 = smov (!%p174_p4, %s717_s20), 7 }
   0xf   : > { %s909_s21 = smul.u32 48, %s994_s18  ;;  %866 = vmatpush3.bf16.msra.mxu0 %v920_v2  ;;  %s719_s13 = sshll.u32 %s994_s18, 1 }
  0x10   : > { %867 = vmatprep.subr.bf16.mxu0 %v921_v3  ;;  %846 = vmatpush3.bf16.msra.mxu1 %v932_v8  ;;  %s182_s27 = scalar_lea.vmem %s1088_s3, %s719_s13 }
  0x11   : > { %s1003_s24 = scalar_lea.vmem %s1085_s0, %s909_s21  ;;  %847 = vmatprep.subr.bf16.mxu1 %v934_v10  ;;  %s718_s21 = sshll.u32 %s1090_s20, 2 }
  0x12   : > { %v927_v5 = vld [vmem:[%s1003_s24] sm:$0xff]   ;;  %v943_v15 = vld [vmem:[%s1003_s24 + $0x18] sm:$0xff]   ;;  %v930_v18 = vld [vmem:[%s1003_s24 + $0x8] sm:$0xff]   ;;  %s177_s23 = scalar_lea.vmem %s1087_s2, %s718_s21 }
  0x13   : > { %877 = vmatprep.mubr.bf16.mxu0 %v927_v5  ;;  %868 = vmatpush3.bf16.msra.mxu0 %v921_v3  ;;  %v946_v21 = vld [vmem:[%s1003_s24 + $0x8] sm:$0xff]   ;;  %v945_v23 = vld [vmem:[%s1003_s24 + $0x20] sm:$0xff]   ;;  %v947_v29 = vld [vmem:[%s1003_s24 + $0x10] sm:$0xff]  }
  0x14   : > { %869 = vmatprep.subr.bf16.mxu0 %v922_v7  ;;  %848 = vmatpush3.bf16.msra.mxu1 %v934_v10 }
  0x15   : > { %849 = vmatprep.subr.bf16.mxu1 %v936_v12  ;;  %857 = vmatprep.mubr.bf16.mxu1 %v943_v15 }
  0x17   : > { %870 = vmatpush3.bf16.msra.mxu0 %v922_v7 }
  0x18   : > { %871 = vmatprep.subr.bf16.mxu0 %v923_v9  ;;  %850 = vmatpush3.bf16.msra.mxu1 %v936_v12 }
  0x19   : > { %851 = vmatprep.subr.bf16.mxu1 %v938_v14 }
  0x1b   : > { %872 = vmatpush3.bf16.msra.mxu0 %v923_v9 }
  0x1c   : > { %873 = vmatprep.subr.bf16.mxu0 %v924_v11  ;;  %852 = vmatpush3.bf16.msra.mxu1 %v938_v14 }
  0x1d   : > { %853 = vmatprep.subr.bf16.mxu1 %v940_v17 }
  0x1f   : > { %874 = vmatpush3.bf16.msra.mxu0 %v924_v11 }
  0x20   : > { %875 = vmatprep.subr.bf16.mxu0 %v925_v13  ;;  %854 = vmatpush3.bf16.msra.mxu1 %v940_v17 }
  0x21   : > { %855 = vmatprep.subr.bf16.mxu1 %v942_v20 }
  0x23   : > { %876 = vmatpush3.bf16.msra.mxu0 %v925_v13 }
  0x24   : > { %881 = vmatprep.subr.bf16.mxu0 %v928_v16  ;;  %856 = vmatpush3.bf16.msra.mxu1 %v942_v20 }
  0x26   : > { %878 = vmatmul.mubr.bf16.vlgmr.msra.gmra.mrb[0].mxu0 %v930_v18 }
  0x27   : > { %882 = vmatpush3.bf16.msra.mxu0 %v928_v16  ;;  %897 = vmatprep.mubr.bf16.mxu0 %v946_v21 }
  0x28   : > { %883 = vmatprep.subr.bf16.mxu0 %v931_v19  ;;  %858 = vmatmul.mubr.bf16.vlgmr.msra.gmra.mrb[0].mxu1 %v945_v23 }
  0x2b   : > { %884 = vmatpush3.bf16.msra.mxu0 %v931_v19 }
  0x2c   : > { %885 = vmatprep.subr.bf16.mxu0 %v933_v22 }
  0x2f   : > { %886 = vmatpush3.bf16.msra.mxu0 %v933_v22 }
  0x30   : > { %887 = vmatprep.subr.bf16.mxu0 %v935_v24 }
  0x33   : > { %888 = vmatpush3.bf16.msra.mxu0 %v935_v24 }
  0x34   : > { %889 = vmatprep.subr.bf16.mxu0 %v937_v25 }
  0x37   : > { %890 = vmatpush3.bf16.msra.mxu0 %v937_v25 }
  0x38   : > { %891 = vmatprep.subr.bf16.mxu0 %v939_v26 }
  0x3b   : > { %892 = vmatpush3.bf16.msra.mxu0 %v939_v26 }
  0x3c   : > { %893 = vmatprep.subr.bf16.mxu0 %v941_v27 }
  0x3f   : > { %894 = vmatpush3.bf16.msra.mxu0 %v941_v27 }
  0x40   : > { %895 = vmatprep.subr.bf16.mxu0 %v944_v28 }
  0x43   : > { %896 = vmatpush3.bf16.msra.mxu0 %v944_v28 }
  0x46   : > { %898 = vmatmul.mubr.bf16.vlgmr.msra.gmra.mrb[0].mxu0 %v947_v29 }
  0xfb   : > { %v859_v30 = vpop.f32.mrb[0].mxu1 }
  0xfc   : > { %v320_v31 = vpop.f32.mrb[1].mxu1 }
  0xfd   : > { %v860_v32 = vpop.f32.mrb[2].mxu1 }
  0xfe   : > { %v323_v33 = vpop.f32.mrb[3].mxu1 }
 0x119   : > { %v899_v34 = vpop.f32.mrb[0].mxu0 }
 0x11a   : > { %v901_v35 = vadd.f32 %v899_v34, %v859_v30  ;;  %v560_v36 = vpop.f32.mrb[1].mxu0 }
 0x11b   : > { %v902_v37 = vadd.f32 %v560_v36, %v320_v31  ;;  %v900_v38 = vpop.f32.mrb[2].mxu0 }
 0x11c   : > { %v903_v39 = vadd.f32 %v900_v38, %v860_v32  ;;  %v563_v40 = vpop.f32.mrb[3].mxu0  ;;  %v610_v47 = vmul.f32 %v901_v35, %v901_v35 }
 0x11d   : > { %v904_v41 = vadd.f32 %v563_v40, %v323_v33  ;;  %v608_v43 = vmul.f32 %v902_v37, %v902_v37 }
 0x11e   : > { %v808_v42 = vpack.c.bf16 %v903_v39, %v901_v35  ;;  %v611_v50 = vmul.f32 %v903_v39, %v903_v39 }
 0x11f   : > { %v803_v44 = vpack.c.bf16 %v904_v41, %v902_v37  ;;  %v599_v45 = vadd.f32 %v904_v41, %v902_v37  ;;  %v609_v46 = vmul.f32 %v904_v41, %v904_v41 }
 0x120   : > { %810 = vst [vmem:[%s177_s23 + $0x8] sm:$0xff] %v808_v42  }
 0x121   : > { %804 = vst [vmem:[%s177_s23] sm:$0xff] %v803_v44   ;;  %v600_v48 = vadd.f32 %v901_v35, %v599_v45  ;;  %v612_v49 = vadd.f32 %v609_v46, %v608_v43 }
 0x123   : > { %v601_v51 = vadd.f32 %v903_v39, %v600_v48  ;;  %v613_v52 = vadd.f32 %v612_v49, %v610_v47 }
 0x125   : > { %v602_v53 = vrot.slane %v601_v51, 4  ;;  %v614_v54 = vadd.f32 %v613_v52, %v611_v50 }
 0x127   : > { %v603_v55 = vadd.f32 %v602_v53, %v601_v51  ;;  %v615_v56 = vrot.slane %v614_v54, 4 }
 0x129   : > { %v604_v57 = vrot.slane %v603_v55, 2  ;;  %v616_v58 = vadd.f32 %v615_v56, %v614_v54 }
 0x12b   : > { %v605_v59 = vadd.f32 %v604_v57, %v603_v55  ;;  %v617_v60 = vrot.slane %v616_v58, 2 }
 0x12d   : > { %v606_v61 = vrot.slane %v605_v59, 1  ;;  %v618_v62 = vadd.f32 %v617_v60, %v616_v58 }
 0x12f   : > { %v619_v63 = vrot.slane %v618_v62, 1  ;;  %v607_v0 = vadd.f32 %v606_v61, %v605_v59 }
 0x131   : > { %v620_v1 = vadd.f32 %v619_v63, %v618_v62 }
 0x133   : > { %v622_v2 = vsel %vm621_vm0, %v607_v0, %v620_v1 }
 0x134   : > { %623 = vst [vmem:[%s182_s27] sm:$0x3] %v622_v2 }
 0x135 PF: > { %s14_s12 = sadd.s32 1, %s954_s12  }
 0x136   : > { %p11_p5 = scmp.ge.s32.totalorder %s14_s12, 4  }
 0x138   :  { %13 = sbr.rel (!%p11_p5) target bundleno = 1 (0x1), region = 74 }

// kernel: discriminator_forward.7
= control target key start
LH: loop header
LB: loop body
LE: loop exit
PB: predicated region body
PF: predicated region fallthrough
CT: control target
= control target key end

     0   :  { %s563_s12 = smov 0   ;;  %s616_s0 = inlined_call_operand.vmem [shape: bf16[2,1,2,16,128], index: 0, kind: input, shape index: {}]   ;;  %s617_s1 = inlined_call_operand.vmem [shape: bf16[1,128,128], index: 1, kind: input, shape index: {}]   ;;  %s618_s2 = inlined_call_operand.vmem [shape: bf16[64,128], index: 2, kind: output, shape index: {0}]   ;;  %s619_s3 = inlined_call_operand.vmem [shape: f32[2,2,128], index: 3, kind: output, shape index: {1}]  }
   0x1 LB: > { %s569_s13 = sadd.s32 4294967295, %s541_s12   ;;  %p449_p0 = scmp.ge.s32.totalorder %s541_s12, 1  ;;  %s541_s12 = sphi %s563_s12, %s14_s12  }
   0x2   : > { %p140_p1 = scmp.lt.s32.totalorder %s541_s12, 3 }
   0x4   : > { %p141_p2 = pnand %p449_p0, %p140_p1 }
   0x5   : > { %v525_v0 = vld [vmem:[%s617_s1] sm:$0xff] (!%p141_p2)   ;;  %p168_p3 = scmp.lt.s32.totalorder (!%p141_p2), %s569_s13, 1  ;;  %v526_v1 = vld [vmem:[%s617_s1 + $0x8] sm:$0xff] (!%p141_p2)   ;;  %v527_v2 = vld [vmem:[%s617_s1 + $0x10] sm:$0xff] (!%p141_p2)   ;;  %s452_s8 = sshll.u32 (!%p141_p2), %s569_s13, 2  ;;  %vm355_vm0 = vcmask (!%p141_p2), 1040384  }
   0x6   : > { %144 = sbr.rel (%p141_p2) target bundleno = 275 (0x113), region = 28  ;;  %497 = vmatprep.subr.bf16.mxu0 (!%p141_p2), %v525_v0  ;;  %v528_v3 = vld [vmem:[%s617_s1 + $0x18] sm:$0xff] (!%p141_p2)   ;;  %v529_v5 = vld [vmem:[%s617_s1 + $0x20] sm:$0xff] (!%p141_p2)   ;;  %v530_v6 = vld [vmem:[%s617_s1 + $0x28] sm:$0xff] (!%p141_p2)   ;;  %p174_p4 = scmp.lt.s32.totalorder (!%p141_p2), %s452_s8, 7 }
   0x7   : > { %498 = vmatpush3.bf16.msra.mxu0 (!%p141_p2), %v525_v0  ;;  %v531_v7 = vld [vmem:[%s617_s1 + $0x30] sm:$0xff] (!%p141_p2)   ;;  %v532_v8 = vld [vmem:[%s617_s1 + $0x38] sm:$0xff] (!%p141_p2)  }
   0x8   : > { %499 = vmatprep.subr.bf16.mxu0 (!%p141_p2), %v526_v1 }
   0xb   : > { %500 = vmatpush3.bf16.msra.mxu0 (!%p141_p2), %v526_v1 }
   0xc   : > { %501 = vmatprep.subr.bf16.mxu0 (!%p141_p2), %v527_v2 }
   0xd   : > { %s581_s18 = scalar_select %p168_p3, %s569_s13, 1 }
   0xe   : > { %s621_s8 = smov (!%p174_p4, %s452_s8), 7 }
   0xf   : > { %s471_s21 = sshll.u32 %s581_s18, 4  ;;  %502 = vmatpush3.bf16.msra.mxu0 %v527_v2  ;;  %s453_s9 = sshll.u32 %s621_s8, 2 }
  0x10   : > { %s172_s24 = scalar_lea.vmem %s616_s0, %s471_s21  ;;  %503 = vmatprep.subr.bf16.mxu0 %v528_v3  ;;  %s177_s14 = scalar_lea.vmem %s618_s2, %s453_s9 }
  0x11   : > { %v533_v4 = vld [vmem:[%s172_s24] sm:$0xff]   ;;  %v534_v9 = vld [vmem:[%s172_s24 + $0x8] sm:$0xff]   ;;  %s454_s13 = sshll.u32 %s581_s18, 1 }
  0x12   : > { %513 = vmatprep.mubr.bf16.mxu0 %v533_v4  ;;  %s182_s17 = scalar_lea.vmem %s619_s3, %s454_s13 }
  0x13   : > { %504 = vmatpush3.bf16.msra.mxu0 %v528_v3 }
  0x14   : > { %505 = vmatprep.subr.bf16.mxu0 %v529_v5 }
  0x17   : > { %506 = vmatpush3.bf16.msra.mxu0 %v529_v5 }
  0x18   : > { %507 = vmatprep.subr.bf16.mxu0 %v530_v6 }
  0x1b   : > { %508 = vmatpush3.bf16.msra.mxu0 %v530_v6 }
  0x1c   : > { %509 = vmatprep.subr.bf16.mxu0 %v531_v7 }
  0x1f   : > { %510 = vmatpush3.bf16.msra.mxu0 %v531_v7 }
  0x20   : > { %511 = vmatprep.subr.bf16.mxu0 %v532_v8 }
  0x23   : > { %512 = vmatpush3.bf16.msra.mxu0 %v532_v8 }
  0x26   : > { %514 = vmatmul.mubr.bf16.vlgmr.msra.gmra.mrb[0].mxu0 %v534_v9 }
  0xf9   : > { %v515_v10 = vpop.f32.mrb[0].mxu0 }
  0xfa   : > { %v298_v11 = vpop.f32.mrb[1].mxu0  ;;  %v344_v19 = vmul.f32 %v515_v10, %v515_v10 }
  0xfb   : > { %v516_v12 = vpop.f32.mrb[2].mxu0  ;;  %v342_v15 = vmul.f32 %v298_v11, %v298_v11 }
  0xfc   : > { %v484_v13 = vpack.c.bf16 %v516_v12, %v515_v10  ;;  %v301_v14 = vpop.f32.mrb[3].mxu0  ;;  %v345_v22 = vmul.f32 %v516_v12, %v516_v12 }
  0xfd   : > { %v479_v16 = vpack.c.bf16 %v301_v14, %v298_v11  ;;  %v333_v17 = vadd.f32 %v301_v14, %v298_v11  ;;  %v343_v18 = vmul.f32 %v301_v14, %v301_v14 }
  0xfe   : > { %486 = vst [vmem:[%s177_s14 + $0x8] sm:$0xff] %v484_v13  }
  0xff   : > { %480 = vst [vmem:[%s177_s14] sm:$0xff] %v479_v16   ;;  %v334_v20 = vadd.f32 %v515_v10, %v333_v17  ;;  %v346_v21 = vadd.f32 %v343_v18, %v342_v15 }
 0x101   : > { %v335_v23 = vadd.f32 %v516_v12, %v334_v20  ;;  %v347_v24 = vadd.f32 %v346_v21, %v344_v19 }
 0x103   : > { %v336_v25 = vrot.slane %v335_v23, 4  ;;  %v348_v26 = vadd.f32 %v347_v24, %v345_v22 }
 0x105   : > { %v337_v27 = vadd.f32 %v336_v25, %v335_v23  ;;  %v349_v28 = vrot.slane %v348_v26, 4 }
 0x107   : > { %v338_v29 = vrot.slane %v337_v27, 2  ;;  %v350_v30 = vadd.f32 %v349_v28, %v348_v26 }
 0x109   : > { %v339_v31 = vadd.f32 %v338_v29, %v337_v27  ;;  %v351_v32 = vrot.slane %v350_v30, 2 }
 0x10b   : > { %v340_v33 = vrot.slane %v339_v31, 1  ;;  %v352_v34 = vadd.f32 %v351_v32, %v350_v30 }
 0x10d   : > { %v353_v35 = vrot.slane %v352_v34, 1  ;;  %v341_v36 = vadd.f32 %v340_v33, %v339_v31 }
 0x10f   : > { %v354_v37 = vadd.f32 %v353_v35, %v352_v34 }
 0x111   : > { %v356_v38 = vsel %vm355_vm0, %v341_v36, %v354_v37 }
 0x112   : > { %357 = vst [vmem:[%s182_s17] sm:$0x3] %v356_v38 }
 0x113 PF: > { %s14_s12 = sadd.s32 1, %s541_s12  }
 0x114   : > { %p11_p5 = scmp.ge.s32.totalorder %s14_s12, 4  }
 0x116   :  { %13 = sbr.rel (!%p11_p5) target bundleno = 1 (0x1), region = 70 }

// kernel: discriminator_forward.6
= control target key start
LH: loop header
LB: loop body
LE: loop exit
PB: predicated region body
PF: predicated region fallthrough
CT: control target
= control target key end

     0   :  { %s977_s12 = smov 0   ;;  %s1086_s0 = inlined_call_operand.vmem [shape: bf16[2,1,4,16,128], index: 0, kind: input, shape index: {}]   ;;  %s1087_s1 = inlined_call_operand.vmem [shape: bf16[3,128,128], index: 1, kind: input, shape index: {}]   ;;  %s1088_s2 = inlined_call_operand.vmem [shape: bf16[64,128], index: 2, kind: output, shape index: {0}]   ;;  %s1089_s3 = inlined_call_operand.vmem [shape: f32[2,2,128], index: 3, kind: output, shape index: {1}]  }
   0x1 LB: > { %s983_s13 = sadd.s32 4294967295, %s955_s12   ;;  %p715_p0 = scmp.ge.s32.totalorder %s955_s12, 1  ;;  %s955_s12 = sphi %s977_s12, %s14_s12  }
   0x2   : > { %p140_p1 = scmp.lt.s32.totalorder %s955_s12, 3 }
   0x4   : > { %p141_p2 = pnand %p715_p0, %p140_p1 }
   0x5   : > { %v919_v0 = vld [vmem:[%s1087_s1] sm:$0xff] (!%p141_p2)   ;;  %p168_p3 = scmp.lt.s32.totalorder (!%p141_p2), %s983_s13, 1  ;;  %v920_v1 = vld [vmem:[%s1087_s1 + $0x8] sm:$0xff] (!%p141_p2)   ;;  %v921_v2 = vld [vmem:[%s1087_s1 + $0x10] sm:$0xff] (!%p141_p2)   ;;  %s718_s20 = sshll.u32 (!%p141_p2), %s983_s13, 2  ;;  %vm621_vm0 = vcmask (!%p141_p2), 1040384  }
   0x6   : > { %144 = sbr.rel (%p141_p2) target bundleno = 309 (0x135), region = 28  ;;  %863 = vmatprep.subr.bf16.mxu0 (!%p141_p2), %v919_v0  ;;  %v922_v3 = vld [vmem:[%s1087_s1 + $0x18] sm:$0xff] (!%p141_p2)   ;;  %v927_v4 = vld [vmem:[%s1087_s1 + $0x40] sm:$0xff] (!%p141_p2)   ;;  %v930_v6 = vld [vmem:[%s1087_s1 + $0x48] sm:$0xff] (!%p141_p2)   ;;  %p174_p4 = scmp.lt.s32.totalorder (!%p141_p2), %s718_s20, 7 }
   0x7   : > { %864 = vmatpush3.bf16.msra.mxu0 (!%p141_p2), %v919_v0  ;;  %843 = vmatprep.subr.bf16.mxu1 (!%p141_p2), %v927_v4  ;;  %v923_v7 = vld [vmem:[%s1087_s1 + $0x20] sm:$0xff] (!%p141_p2)   ;;  %v933_v8 = vld [vmem:[%s1087_s1 + $0x50] sm:$0xff] (!%p141_p2)   ;;  %v924_v9 = vld [vmem:[%s1087_s1 + $0x28] sm:$0xff] (!%p141_p2)  }
   0x8   : > { %865 = vmatprep.subr.bf16.mxu0 (!%p141_p2), %v920_v1  ;;  %844 = vmatpush3.bf16.msra.mxu1 (!%p141_p2), %v927_v4  ;;  %v935_v10 = vld [vmem:[%s1087_s1 + $0x58] sm:$0xff] (!%p141_p2)   ;;  %v925_v11 = vld [vmem:[%s1087_s1 + $0x30] sm:$0xff] (!%p141_p2)   ;;  %v937_v12 = vld [vmem:[%s1087_s1 + $0x60] sm:$0xff] (!%p141_p2)  }
   0x9   : > { %845 = vmatprep.subr.bf16.mxu1 (!%p141_p2), %v930_v6  ;;  %v926_v13 = vld [vmem:[%s1087_s1 + $0x38] sm:$0xff] (!%p141_p2)   ;;  %v939_v14 = vld [vmem:[%s1087_s1 + $0x68] sm:$0xff] (!%p141_p2)   ;;  %v929_v16 = vld [vmem:[%s1087_s1 + $0x80] sm:$0xff] (!%p141_p2)  }
   0xa   : > { %v941_v17 = vld [vmem:[%s1087_s1 + $0x70] sm:$0xff] (!%p141_p2)   ;;  %v932_v19 = vld [vmem:[%s1087_s1 + $0x88] sm:$0xff] (!%p141_p2)   ;;  %v943_v20 = vld [vmem:[%s1087_s1 + $0x78] sm:$0xff] (!%p141_p2)  }
   0xb   : > { %866 = vmatpush3.bf16.msra.mxu0 (!%p141_p2), %v920_v1  ;;  %v934_v22 = vld [vmem:[%s1087_s1 + $0x90] sm:$0xff] (!%p141_p2)   ;;  %v936_v24 = vld [vmem:[%s1087_s1 + $0x98] sm:$0xff] (!%p141_p2)   ;;  %v938_v25 = vld [vmem:[%s1087_s1 + $0xa0] sm:$0xff] (!%p141_p2)  }
   0xc   : > { %867 = vmatprep.subr.bf16.mxu0 (!%p141_p2), %v921_v2  ;;  %846 = vmatpush3.bf16.msra.mxu1 (!%p141_p2), %v930_v6  ;;  %v940_v26 = vld [vmem:[%s1087_s1 + $0xa8] sm:$0xff] (!%p141_p2)   ;;  %v942_v27 = vld [vmem:[%s1087_s1 + $0xb0] sm:$0xff] (!%p141_p2)   ;;  %v945_v28 = vld [vmem:[%s1087_s1 + $0xb8] sm:$0xff] (!%p141_p2)  }
   0xd   : > { %s995_s18 = scalar_select %p168_p3, %s983_s13, 1  ;;  %847 = vmatprep.subr.bf16.mxu1 %v933_v8 }
   0xe   : > { %s1091_s20 = smov (!%p174_p4, %s718_s20), 7 }
   0xf   : > { %s797_s21 = sshll.u32 %s995_s18, 5  ;;  %868 = vmatpush3.bf16.msra.mxu0 %v921_v2  ;;  %s720_s13 = sshll.u32 %s995_s18, 1 }
  0x10   : > { %s1004_s24 = scalar_lea.vmem %s1086_s0, %s797_s21  ;;  %869 = vmatprep.subr.bf16.mxu0 %v922_v3  ;;  %848 = vmatpush3.bf16.msra.mxu1 %v933_v8  ;;  %s719_s21 = sshll.u32 %s1091_s20, 2 }
  0x11   : > { %v928_v5 = vld [vmem:[%s1004_s24] sm:$0xff]   ;;  %849 = vmatprep.subr.bf16.mxu1 %v935_v10  ;;  %v944_v15 = vld [vmem:[%s1004_s24 + $0x8] sm:$0xff]   ;;  %v947_v21 = vld [vmem:[%s1004_s24 + $0x10] sm:$0xff]   ;;  %s177_s23 = scalar_lea.vmem %s1088_s2, %s719_s21  ;;  %s182_s27 = scalar_lea.vmem %s1089_s3, %s720_s13 }
  0x12   : > { %879 = vmatprep.mubr.bf16.mxu0 %v928_v5  ;;  %859 = vmatprep.mubr.bf16.mxu1 %v944_v15  ;;  %v931_v18 = vld [vmem:[%s1004_s24 + $0x8] sm:$0xff]   ;;  %v946_v23 = vld [vmem:[%s1004_s24 + $0x10] sm:$0xff]   ;;  %v948_v29 = vld [vmem:[%s1004_s24 + $0x18] sm:$0xff]  }
  0x13   : > { %870 = vmatpush3.bf16.msra.mxu0 %v922_v3 }
  0x14   : > { %871 = vmatprep.subr.bf16.mxu0 %v923_v7  ;;  %850 = vmatpush3.bf16.msra.mxu1 %v935_v10 }
  0x15   : > { %851 = vmatprep.subr.bf16.mxu1 %v937_v12 }
  0x17   : > { %872 = vmatpush3.bf16.msra.mxu0 %v923_v7 }
  0x18   : > { %873 = vmatprep.subr.bf16.mxu0 %v924_v9  ;;  %852 = vmatpush3.bf16.msra.mxu1 %v937_v12 }
  0x19   : > { %853 = vmatprep.subr.bf16.mxu1 %v939_v14 }
  0x1b   : > { %874 = vmatpush3.bf16.msra.mxu0 %v924_v9 }
  0x1c   : > { %875 = vmatprep.subr.bf16.mxu0 %v925_v11  ;;  %854 = vmatpush3.bf16.msra.mxu1 %v939_v14 }
  0x1d   : > { %855 = vmatprep.subr.bf16.mxu1 %v941_v17 }
  0x1f   : > { %876 = vmatpush3.bf16.msra.mxu0 %v925_v11 }
  0x20   : > { %877 = vmatprep.subr.bf16.mxu0 %v926_v13  ;;  %856 = vmatpush3.bf16.msra.mxu1 %v941_v17 }
  0x21   : > { %857 = vmatprep.subr.bf16.mxu1 %v943_v20 }
  0x23   : > { %878 = vmatpush3.bf16.msra.mxu0 %v926_v13 }
  0x24   : > { %883 = vmatprep.subr.bf16.mxu0 %v929_v16  ;;  %858 = vmatpush3.bf16.msra.mxu1 %v943_v20 }
  0x26   : > { %880 = vmatmul.mubr.bf16.vlgmr.msra.gmra.mrb[0].mxu0 %v931_v18 }
  0x27   : > { %884 = vmatpush3.bf16.msra.mxu0 %v929_v16  ;;  %899 = vmatprep.mubr.bf16.mxu0 %v947_v21 }
  0x28   : > { %885 = vmatprep.subr.bf16.mxu0 %v932_v19  ;;  %860 = vmatmul.mubr.bf16.vlgmr.msra.gmra.mrb[0].mxu1 %v946_v23 }
  0x2b   : > { %886 = vmatpush3.bf16.msra.mxu0 %v932_v19 }
  0x2c   : > { %887 = vmatprep.subr.bf16.mxu0 %v934_v22 }
  0x2f   : > { %888 = vmatpush3.bf16.msra.mxu0 %v934_v22 }
  0x30   : > { %889 = vmatprep.subr.bf16.mxu0 %v936_v24 }
  0x33   : > { %890 = vmatpush3.bf16.msra.mxu0 %v936_v24 }
  0x34   : > { %891 = vmatprep.subr.bf16.mxu0 %v938_v25 }
  0x37   : > { %892 = vmatpush3.bf16.msra.mxu0 %v938_v25 }
  0x38   : > { %893 = vmatprep.subr.bf16.mxu0 %v940_v26 }
  0x3b   : > { %894 = vmatpush3.bf16.msra.mxu0 %v940_v26 }
  0x3c   : > { %895 = vmatprep.subr.bf16.mxu0 %v942_v27 }
  0x3f   : > { %896 = vmatpush3.bf16.msra.mxu0 %v942_v27 }
  0x40   : > { %897 = vmatprep.subr.bf16.mxu0 %v945_v28 }
  0x43   : > { %898 = vmatpush3.bf16.msra.mxu0 %v945_v28 }
  0x46   : > { %900 = vmatmul.mubr.bf16.vlgmr.msra.gmra.mrb[0].mxu0 %v948_v29 }
  0xfb   : > { %v861_v30 = vpop.f32.mrb[0].mxu1 }
  0xfc   : > { %v320_v31 = vpop.f32.mrb[1].mxu1 }
  0xfd   : > { %v862_v32 = vpop.f32.mrb[2].mxu1 }
  0xfe   : > { %v323_v33 = vpop.f32.mrb[3].mxu1 }
 0x119   : > { %v901_v34 = vpop.f32.mrb[0].mxu0 }
 0x11a   : > { %v903_v35 = vadd.f32 %v901_v34, %v861_v30  ;;  %v560_v36 = vpop.f32.mrb[1].mxu0 }
 0x11b   : > { %v904_v37 = vadd.f32 %v560_v36, %v320_v31  ;;  %v902_v38 = vpop.f32.mrb[2].mxu0 }
 0x11c   : > { %v905_v39 = vadd.f32 %v902_v38, %v862_v32  ;;  %v563_v40 = vpop.f32.mrb[3].mxu0  ;;  %v610_v47 = vmul.f32 %v903_v35, %v903_v35 }
 0x11d   : > { %v906_v41 = vadd.f32 %v563_v40, %v323_v33  ;;  %v608_v43 = vmul.f32 %v904_v37, %v904_v37 }
 0x11e   : > { %v810_v42 = vpack.c.bf16 %v905_v39, %v903_v35  ;;  %v611_v50 = vmul.f32 %v905_v39, %v905_v39 }
 0x11f   : > { %v805_v44 = vpack.c.bf16 %v906_v41, %v904_v37  ;;  %v599_v45 = vadd.f32 %v906_v41, %v904_v37  ;;  %v609_v46 = vmul.f32 %v906_v41, %v906_v41 }
 0x120   : > { %812 = vst [vmem:[%s177_s23 + $0x8] sm:$0xff] %v810_v42  }
 0x121   : > { %806 = vst [vmem:[%s177_s23] sm:$0xff] %v805_v44   ;;  %v600_v48 = vadd.f32 %v903_v35, %v599_v45  ;;  %v612_v49 = vadd.f32 %v609_v46, %v608_v43 }
 0x123   : > { %v601_v51 = vadd.f32 %v905_v39, %v600_v48  ;;  %v613_v52 = vadd.f32 %v612_v49, %v610_v47 }
 0x125   : > { %v602_v53 = vrot.slane %v601_v51, 4  ;;  %v614_v54 = vadd.f32 %v613_v52, %v611_v50 }
 0x127   : > { %v603_v55 = vadd.f32 %v602_v53, %v601_v51  ;;  %v615_v56 = vrot.slane %v614_v54, 4 }
 0x129   : > { %v604_v57 = vrot.slane %v603_v55, 2  ;;  %v616_v58 = vadd.f32 %v615_v56, %v614_v54 }
 0x12b   : > { %v605_v59 = vadd.f32 %v604_v57, %v603_v55  ;;  %v617_v60 = vrot.slane %v616_v58, 2 }
 0x12d   : > { %v606_v61 = vrot.slane %v605_v59, 1  ;;  %v618_v62 = vadd.f32 %v617_v60, %v616_v58 }
 0x12f   : > { %v619_v63 = vrot.slane %v618_v62, 1  ;;  %v607_v0 = vadd.f32 %v606_v61, %v605_v59 }
 0x131   : > { %v620_v1 = vadd.f32 %v619_v63, %v618_v62 }
 0x133   : > { %v622_v2 = vsel %vm621_vm0, %v607_v0, %v620_v1 }
 0x134   : > { %623 = vst [vmem:[%s182_s27] sm:$0x3] %v622_v2 }
 0x135 PF: > { %s14_s12 = sadd.s32 1, %s955_s12  }
 0x136   : > { %p11_p5 = scmp.ge.s32.totalorder %s14_s12, 4  }
 0x138   :  { %13 = sbr.rel (!%p11_p5) target bundleno = 1 (0x1), region = 74 }

// kernel: discriminator_forward.8
= control target key start
LH: loop header
LB: loop body
LE: loop exit
PB: predicated region body
PF: predicated region fallthrough
CT: control target
= control target key end

     0   :  { %15 = vsyncpa [#allocation3], 0  ;;  %s937_s0 = inlined_call_operand.vmem [shape: bf16[64,128], index: 0, kind: input, shape index: {}]   ;;  %s938_s1 = inlined_call_operand.vmem [shape: f32[2,128], index: 1, kind: input, shape index: {}]   ;;  %s939_s2 = inlined_call_operand.vmem [shape: f32[1,128], index: 2, kind: input, shape index: {}]   ;;  %s940_s3 = inlined_call_operand.vmem [shape: f32[1,128], index: 3, kind: input, shape index: {}]   ;;  %s941_s4 = inlined_call_operand.vmem [shape: bf16[64,128], index: 4, kind: input, shape index: {}]   ;;  %s942_s5 = inlined_call_operand.vmem [shape: f32[2,128], index: 5, kind: input, shape index: {}]   ;;  %s943_s6 = inlined_call_operand.vmem [shape: f32[1,128], index: 6, kind: input, shape index: {}]   ;;  %s944_s7 = inlined_call_operand.vmem [shape: f32[1,128], index: 7, kind: input, shape index: {}]   ;;  %s945_s8 = inlined_call_operand.hbm [shape: f32[64,128], index: 8, kind: output, shape index: {0}]   ;;  %s946_s9 = inlined_call_operand.vmem [shape: f32[2,1,128], index: 9, kind: output, shape index: {1}]  }
   0x1   :  { %17 = vsyncpa [#allocation3 + $0x1], 0  ;;  %s805_s30 = smov 0   ;;  %s807_s10 = smov 0  }
   0x2   :  { %s809_s11 = smov 0   ;;  %s811_s12 = smov 0  }
   0x3 LB: > { %s826_s13 = sadd.s32 4294967295, %s750_s12   ;;  %s606_s14 = sadd.s32 4294967294, %s750_s12   ;;  %s750_s12 = sphi %s811_s12, %s952_s12   ;;  %s746_s11 = sphi %s809_s11, %s951_s11   ;;  %s742_s10 = sphi %s807_s10, %s950_s10   ;;  %s738_s30 = sphi %s805_s30, %s949_s30  }
   0x4   : > { %s830_s15 = sadd.s32 1, %s750_s12   ;;  %s208_s16 = sadd.s32 1, %s746_s11 }
   0x5   : > { %s205_s17 = ssub.s32 %s750_s12, %s830_s15  ;;  %p218_p0 = scmp.ne.s32.totalorder %s746_s11, %s742_s10 }
   0x6   : > { %p206_p1 = scmp.eq.s32.totalorder %s205_s17, 0  ;;  %p219_p2 = scmp.eq.s32.totalorder %s826_s13, 1 }
   0x7   : > { %p224_p3 = scmp.ne.s32.totalorder %s742_s10, %s738_s30  ;;  %p225_p4 = scmp.eq.s32.totalorder %s606_s14, 1 }
   0x8   : > { %s841_s18 = scalar_select %p206_p1, %s746_s11, %s208_s16  }
   0x9   : > { %p843_p5 = por %p219_p2, %p218_p0  ;;  %p847_p6 = por %p225_p4, %p224_p3 }
   0xa   : > { %p609_p7 = scmp.ge.s32.totalorder %s750_s12, 1  ;;  %p305_p8 = scmp.lt.s32.totalorder %s750_s12, 3 }
   0xc   : > { %p306_p9 = pnand %p609_p7, %p305_p8 }
   0xd   : > { %s611_s21 = sshll.u32 (!%p306_p9), %s826_s13, 2  ;;  %v373_v0 = vld [vmem:[%s938_s1] sm:$0x3] (!%p306_p9)  ;;  %v385_v9 = vlaneseq (!%p306_p9)  ;;  %s341_s25 = sand.u32 (!%p306_p9), 1, %s742_s10  }
   0xe   : > { %309 = sbr.rel (%p306_p9) target bundleno = 80 (0x50), region = 52  ;;  %v376_v1 = vmul.f32 (!%p306_p9), 0.015625, %v373_v0  ;;  %v426_v2 = vld [vmem:[%s942_s5] sm:$0x3] (!%p306_p9)  ;;  %p350_p10 = scmp.lt.s32.totalorder (!%p306_p9), %s611_s21, 7 }
   0xf   : > { %v429_v4 = vmul.f32 (!%p306_p9), 0.015625, %v426_v2  ;;  %v386_v14 = vshrl.u32 (!%p306_p9), %v385_v9, 7  ;;  %v615_v25 = vld [vmem:[%s939_s2] ss:$0 sm:$0xff] (!%p306_p9)  ;;  %s752_s28 = smov (!%p306_p9), [#allocation2]  }
  0x10   : > { %v377_v3 = vmul.f32 (!%p306_p9), %v376_v1, %v376_v1  ;;  %v617_v32 = vld [vmem:[%s943_s6] ss:$0 sm:$0xff] (!%p306_p9) }
  0x11   : > { %v430_v6 = vmul.f32 (!%p306_p9), %v429_v4, %v429_v4  ;;  %v387_v16 = vsub.s32 (!%p306_p9), 0, %v386_v14  ;;  %v402_v27 = vsub.s32 (!%p306_p9), 1, %v386_v14  ;;  %v616_v45 = vld [vmem:[%s940_s3] ss:$0 sm:$0xff] (!%p306_p9) }
  0x12   : > { %v379_v5 = vrot.slane (!%p306_p9), %v377_v3, 7  ;;  %v618_v52 = vld [vmem:[%s944_s7] ss:$0 sm:$0xff] (!%p306_p9) }
  0x13   : > { %v432_v8 = vrot.slane (!%p306_p9), %v430_v6, 7  ;;  %v388_v21 = vrot.slane (!%p306_p9), %v376_v1, %v387_v16  ;;  %v441_v29 = vrot.slane (!%p306_p9), %v429_v4, %v387_v16 }
  0x14   : > { %v381_v7 = vsub.f32 (!%p306_p9), %v376_v1, %v379_v5 }
  0x15   : > { %s954_s21 = smov (!%p350_p10, %s611_s21), 7  ;;  %v434_v11 = vsub.f32 %v429_v4, %v432_v8 }
  0x16   : > { %v382_v10 = vmax.f32 %v381_v7, 0.0  ;;  %s612_s26 = sshll.u32 %s954_s21, 2  ;;  %s624_s21 = sshll.u32 %s826_s13, 9 }
  0x17   : > { %v435_v13 = vmax.f32 %v434_v11, 0.0  ;;  %s353_s29 = scalar_lea.vmem %s937_s0, %s612_s26  ;;  %s359_s17 = scalar_lea.vmem %s941_s4, %s612_s26 }
  0x18   : > { %v383_v12 = vadd.f32 1e-05, %v382_v10  ;;  %v626_v17 = vld [vmem:[%s353_s29] sm:$0xff]   ;;  %v641_v18 = vld [vmem:[%s353_s29 + $0x8] sm:$0xff]   ;;  %s610_s26 = sshll.u32 %s341_s25, 5  ;;  %s887_s24 = scalar_lea.hbm %s945_s8, %s624_s21 }
  0x19   : > { %v436_v15 = vadd.f32 1e-05, %v435_v13  ;;  %v634_v19 = vld [vmem:[%s359_s17] sm:$0xff]   ;;  %v627_v20 = vunpack.c.l.bf16 %v626_v17  ;;  %v628_v22 = vunpack.c.h.bf16 %v626_v17  ;;  %v631_v23 = vunpack.c.l.bf16 %v641_v18  ;;  %v642_v24 = vld [vmem:[%s359_s17 + $0x8] sm:$0xff]   ;;  %s343_s16 = scalar_lea.vmem [#allocation2], %s610_s26  ;;  %s891_s26 = scalar_lea.sflag [#allocation3], %s341_s25 }
  0x1a   : > { %684 = vrsqrt.f32 %v383_v12  ;;  %v632_v26 = vunpack.c.h.bf16 %v641_v18  ;;  %v635_v28 = vunpack.c.l.bf16 %v634_v19  ;;  %v636_v30 = vunpack.c.h.bf16 %v634_v19  ;;  %s510_s17 = sshll.u32 %s343_s16, 4  ;;  %s692_s29 = sshll.u32 %s752_s28, 4  ;;  %s882_s17 = int_to_ptr.vmem [resolvable:$true] %s510_s17  ;;  %s693_s29 = int_to_ptr.vmem [resolvable:$false] %s692_s29 }
  0x1b   : > { %686 = vrsqrt.f32 %v436_v15  ;;  %v639_v33 = vunpack.c.l.bf16 %v642_v24  ;;  %v640_v34 = vunpack.c.h.bf16 %v642_v24  ;;  %v389_v35 = vsub.f32 %v627_v20, %v388_v21  ;;  %s688_s27 = scalar_lea.vmem %s882_s17, 512  ;;  %s694_s14 = scalar_lea.vmem %s693_s29, 1024 }
  0x1c   : > { %v390_v37 = vsub.f32 %v628_v22, %v388_v21  ;;  %v391_v38 = vsub.f32 %v631_v23, %v388_v21  ;;  %v392_v40 = vsub.f32 %v632_v26, %v388_v21  ;;  %v442_v42 = vsub.f32 %v635_v28, %v441_v29  ;;  %p689_p11 = scmp.ne.s32.totalorder %s882_s17, %s688_s27  ;;  %p695_p0 = scmp.lt.s32.totalorder %s882_s17, %s693_s29 }
  0x1d   : > { %v443_v44 = vsub.f32 %v636_v30, %v441_v29  ;;  %v444_v46 = vsub.f32 %v639_v33, %v441_v29  ;;  %v445_v47 = vsub.f32 %v640_v34, %v441_v29  ;;  %p696_p1 = scmp.lt.s32.totalorder %s694_s14, %s688_s27 }
  0x1e   : > { %p690_p12 = pnand %p689_p11, %p843_p5 }
  0x1f   : > { %p697_p2 = por %p696_p1, %p695_p0 }
  0x20   : > { %p691_p13 = pneg %p690_p12 }
  0x22   : > { %p698_p3 = pnand %p697_p2, %p691_p13 }
  0x24   : > { %v685_v31 = vpop.eup %684 }
  0x25   : > { %v399_v36 = vmul.f32 %v685_v31, %v615_v25  ;;  %v687_v39 = vpop.eup %686 }
  0x26   : > { %v452_v43 = vmul.f32 %v687_v39, %v617_v32 }
  0x27   : > { %v403_v41 = vrot.slane %v399_v36, %v402_v27 }
  0x28   : > { %v456_v49 = vrot.slane %v452_v43, %v402_v27 }
  0x29   : > { %v404_v48 = vmul.f32 %v403_v41, %v389_v35  ;;  %v405_v50 = vmul.f32 %v403_v41, %v390_v37  ;;  %v406_v51 = vmul.f32 %v403_v41, %v391_v38  ;;  %v407_v53 = vmul.f32 %v403_v41, %v392_v40 }
  0x2a   : > { %v457_v55 = vmul.f32 %v456_v49, %v442_v42  ;;  %v458_v57 = vmul.f32 %v456_v49, %v443_v44  ;;  %v459_v59 = vmul.f32 %v456_v49, %v444_v46  ;;  %v460_v61 = vmul.f32 %v456_v49, %v445_v47 }
  0x2b   : > { %v414_v54 = vadd.f32 %v616_v45, %v404_v48  ;;  %v415_v56 = vadd.f32 %v616_v45, %v405_v50  ;;  %v416_v58 = vadd.f32 %v616_v45, %v406_v51  ;;  %v417_v60 = vadd.f32 %v616_v45, %v407_v53 }
  0x2c   : > { %v467_v62 = vadd.f32 %v618_v52, %v457_v55  ;;  %v468_v63 = vadd.f32 %v618_v52, %v458_v57  ;;  %v469_v0 = vadd.f32 %v618_v52, %v459_v59  ;;  %v470_v1 = vadd.f32 %v618_v52, %v460_v61 }
  0x2e   : > { %v471_v2 = vadd.f32 %v467_v62, %v414_v54  ;;  %v472_v3 = vadd.f32 %v468_v63, %v415_v56  ;;  %v473_v4 = vadd.f32 %v469_v0, %v416_v58  ;;  %v474_v5 = vadd.f32 %v470_v1, %v417_v60 }
  0x30   : > { %v475_v6 = vmax.f32 %v471_v2, 0.0  ;;  %v476_v7 = vmax.f32 %v472_v3, 0.0  ;;  %v477_v8 = vmax.f32 %v473_v4, 0.0  ;;  %v478_v9 = vmax.f32 %v474_v5, 0.0 }
  0x32   : > { %479 = vst [vmem:[%s343_s16] sm:$0xff] %v475_v6  ;;  %480 = vst [vmem:[%s343_s16 + $0x8] sm:$0xff] %v476_v7  ;;  %v483_v10 = vadd.f32 %v476_v7, %v475_v6 }
  0x33   : > { %481 = vst [vmem:[%s343_s16 + $0x10] sm:$0xff] %v477_v8  ;;  %482 = vst [vmem:[%s343_s16 + $0x18] sm:$0xff] %v478_v9 }
  0x34   : > { %v484_v11 = vadd.f32 %v483_v10, %v477_v8 }
  0x35   : > { %701 = shalt.err (!%p698_p3)
}
  0x36   : > { %s702_s25 = scalar_lea.hbm %s887_s24, 512  ;;  %s706_s22 = scalar_lea.hbm %s945_s8, 1024 }
  0x37   : > { %p703_p4 = scmp.ne.s32.totalorder %s887_s24, %s702_s25  ;;  %p707_p9 = scmp.lt.u32.totalorder %s887_s24, %s945_s8 }
  0x38   : > { %p708_p10 = scmp.lt.u32.totalorder %s706_s22, %s702_s25  ;;  %p710_p12 = scmp.lt.u32.totalorder %s702_s25, %s887_s24 }
  0x39   : > { %p704_p7 = pnand %p703_p4, %p843_p5 }
  0x3a   : > { %p709_p11 = por %p708_p10, %p707_p9 }
  0x3b   : > { %p705_p8 = pneg %p704_p7 }
  0x3c   : > { %p711_p13 = por %p710_p12, %p709_p11 }
  0x3e   : > { %p712_p0 = pnand %p711_p13, %p705_p8 }
  0x40   : > { %715 = shalt.err (!%p712_p0)
}
  0x41   : > { %s753_s27 = smov 128   ;;  %s754_s29 = smov 8   ;;  %v485_v12 = vadd.f32 %v484_v11, %v478_v9 }
  0x42   : > { %643 = dma.vmem_to_hbm [thread:$0]  (%p843_p5), %s882_s17, 512, %s887_s24, %s891_s26, %s753_s27, %s753_s27, %s754_s29  }
  0x43   : > { %v486_v13 = vrot.slane %v485_v12, 4  ;;  %p362_p1 = scmp.lt.s32.totalorder %s826_s13, 1 }
  0x45   : > { %v487_v14 = vadd.f32 %v486_v13, %v485_v12  ;;  %s956_s13 = smov (!%p362_p1, %s826_s13), 1 }
  0x46   : > { %s364_s16 = scalar_lea.vmem %s946_s9, %s956_s13 }
  0x47   : > { %v488_v15 = vrot.slane %v487_v14, 2 }
  0x49   : > { %v489_v16 = vadd.f32 %v488_v15, %v487_v14 }
  0x4b   : > { %v490_v17 = vrot.slane %v489_v16, 1 }
  0x4d   : > { %v491_v18 = vadd.f32 %v490_v17, %v489_v16 }
  0x4f   : > { %492 = vst [vmem:[%s364_s16] sm:$0x1] %v491_v18 }
  0x50 PF: > { %p649_p2 = scmp.ge.s32.totalorder %s750_s12, 2  ;;  %s528_s19 = sand.u32 1, %s738_s30  }
  0x51   : > { %s529_s17 = scalar_lea.sflag [#allocation3], %s528_s19 }
  0x52   : > { %p646_p5 = pnand %p649_p2, %p847_p6 }
  0x54   : > { %733 = dma.done.wait (!%p646_p5), %s529_s17, 512  }
  0x55   : > { %735 = vsyncadd (!%p646_p5), %s529_s17, 4294966784  ;;  %p20_p3 = scmp.ge.s32.totalorder %s830_s15, 4   ;;  %s949_s30 = smov %s742_s10 }
  0x56   : > { %s950_s10 = smov %s746_s11  ;;  %s951_s11 = smov %s841_s18 }
  0x57   : > { %s952_s12 = smov %s830_s15  ;;  %22 = sbr.rel (!%p20_p3) target bundleno = 3 (0x3), region = 102 }
  0x5e   :  { %540 = vsyncpa [#allocation3], 1 }
  0x5f   :  { %542 = vsyncpa [#allocation3 + $0x1], 1 }

// kernel: discriminator_forward.9
= control target key start
LH: loop header
LB: loop body
LE: loop exit
PB: predicated region body
PF: predicated region fallthrough
CT: control target
= control target key end

     0   :  { %v204_v0 = vmov 0.0|0.0   ;;  %vm205_vm0 = vmmov 0   ;;  %v206_v4 = vmov 0.0   ;;  %s284_s1 = inlined_call_operand.vmem [shape: f32[128,128], index: 1, kind: input, shape index: {}]   ;;  %s285_s0 = inlined_call_operand.vmem [shape: f32[2,128], index: 0, kind: input, shape index: {}]   ;;  %s286_s2 = inlined_call_operand.vmem [shape: f32[1,128], index: 2, kind: input, shape index: {}]   ;;  %s287_s3 = inlined_call_operand.vmem [shape: f32[2,128], index: 3, kind: output, shape index: {}]  }
   0x1   :  { %173 = vmatprep.subr.bf16.mxu0 %v204_v0  ;;  %v15_v1 = vld [vmem:[%s284_s1] sm:$0xff]  ;;  %v16_v2 = vld [vmem:[%s284_s1 + $0x8] sm:$0xff]  ;;  %v17_v3 = vld [vmem:[%s284_s1 + $0x10] sm:$0xff]  ;;  %170 = vmatprep.mubr.msk.f32.mxu0 %vm205_vm0, %v206_v4 }
   0x2   :  { %v174_v5 = vpack.c.bf16 %v16_v2, %v15_v1  ;;  %v18_v6 = vld [vmem:[%s284_s1 + $0x18] sm:$0xff]  ;;  %v19_v8 = vld [vmem:[%s284_s1 + $0x20] sm:$0xff]  ;;  %v20_v9 = vld [vmem:[%s284_s1 + $0x28] sm:$0xff] }
   0x3   :  { %v177_v7 = vpack.c.bf16 %v18_v6, %v17_v3  ;;  %v180_v10 = vpack.c.bf16 %v20_v9, %v19_v8  ;;  %v21_v11 = vld [vmem:[%s284_s1 + $0x30] sm:$0xff]  ;;  %v22_v12 = vld [vmem:[%s284_s1 + $0x38] sm:$0xff]  ;;  %v23_v14 = vld [vmem:[%s284_s1 + $0x40] sm:$0xff] }
   0x4   :  { %175 = vmatpush3.bf16.msra.mxu0 %v174_v5  ;;  %v183_v13 = vpack.c.bf16 %v22_v12, %v21_v11  ;;  %v24_v15 = vld [vmem:[%s284_s1 + $0x48] sm:$0xff]  ;;  %v25_v17 = vld [vmem:[%s284_s1 + $0x50] sm:$0xff]  ;;  %v26_v18 = vld [vmem:[%s284_s1 + $0x58] sm:$0xff] }
   0x5   :  { %176 = vmatprep.subr.bf16.mxu0 %v204_v0  ;;  %v186_v16 = vpack.c.bf16 %v24_v15, %v23_v14  ;;  %v189_v19 = vpack.c.bf16 %v26_v18, %v25_v17  ;;  %v27_v20 = vld [vmem:[%s284_s1 + $0x60] sm:$0xff]  ;;  %v28_v21 = vld [vmem:[%s284_s1 + $0x68] sm:$0xff]  ;;  %v29_v23 = vld [vmem:[%s284_s1 + $0x70] sm:$0xff] }
   0x6   :  { %v192_v22 = vpack.c.bf16 %v28_v21, %v27_v20  ;;  %v30_v24 = vld [vmem:[%s284_s1 + $0x78] sm:$0xff]  ;;  %v14_v26 = vld [vmem:[%s285_s0] sm:$0x3] }
   0x7   :  { %v195_v25 = vpack.c.bf16 %v30_v24, %v29_v23  ;;  %v119_v27 = vld [vmem:[%s286_s2] ss:$0 sm:$0xff] }
   0x8   :  { %178 = vmatpush3.bf16.msra.mxu0 %v177_v7 }
   0x9   :  { %179 = vmatprep.subr.bf16.mxu0 %v204_v0 }
   0xc   :  { %181 = vmatpush3.bf16.msra.mxu0 %v180_v10 }
   0xd   :  { %182 = vmatprep.subr.bf16.mxu0 %v204_v0 }
  0x10   :  { %184 = vmatpush3.bf16.msra.mxu0 %v183_v13 }
  0x11   :  { %185 = vmatprep.subr.bf16.mxu0 %v204_v0 }
  0x14   :  { %187 = vmatpush3.bf16.msra.mxu0 %v186_v16 }
  0x15   :  { %188 = vmatprep.subr.bf16.mxu0 %v204_v0 }
  0x18   :  { %190 = vmatpush3.bf16.msra.mxu0 %v189_v19 }
  0x19   :  { %191 = vmatprep.subr.bf16.mxu0 %v204_v0 }
  0x1c   :  { %193 = vmatpush3.bf16.msra.mxu0 %v192_v22 }
  0x1d   :  { %194 = vmatprep.subr.bf16.mxu0 %v204_v0 }
  0x20   :  { %196 = vmatpush3.bf16.msra.mxu0 %v195_v25 }
  0x23   :  { %171 = vmatmul.mubr.f32.vlgmr.msra.gmra.mrb[0].mxu0 %v14_v26 }
  0xf6   :  { %v104_v28 = vpop.f32.mrb[0].mxu0 }
  0xf7   :  { %v105_v29 = vadd.f32 %v119_v27, %v104_v28  ;;  %v172_v30 = vpop.f32.mrb[1].mxu0 }
  0xf9   :  { %v120_v31 = vmul.f32 -1.442695, %v105_v29 }
  0xfb   :  { %200 = vpow2.f32 %v120_v31 }
 0x105   :  { %v201_v32 = vpop.eup %200 }
 0x106   :  { %v111_v33 = vadd.f32 1.0, %v201_v32 }
 0x108   :  { %202 = vrcp.f32 %v111_v33 }
 0x112   :  { %v203_v34 = vpop.eup %202 }
 0x113   :  { %114 = vst [vmem:[%s287_s3] sm:$0x3] %v203_v34 }

</bundles_post_ra>
